<compile_context>
chip_gen: v5e
topology: v5e:2x2
jax: 0.10.0
libtpu: 0.0.40
codegen_flags: <defaults>
</compile_context>

<pallas_src>
import functools
import math

import jax
import jax.numpy as jnp
from jax import lax
from jax.experimental import pallas as pl
from jax.experimental.pallas import tpu as pltpu


def _round_up(x, m):
    return ((x + m - 1) // m) * m


# ----------------------------------------------------------------------------
# Hardware-awareness helpers
# ----------------------------------------------------------------------------
def _vmem_capacity_bytes():
    """Best-effort VMEM capacity query; 0 if unknown."""
    try:
        info = pltpu.get_tpu_info()
        cap = getattr(info, "vmem_capacity_bytes", None)
        if cap:
            return int(cap)
    except Exception:
        pass
    try:
        kind = jax.devices()[0].device_kind.lower()
        if "v7" in kind or "7x" in kind:
            return 64 * 1024 * 1024
        if "v5" in kind or "v6" in kind:
            return 128 * 1024 * 1024
    except Exception:
        pass
    return 0


_single_buffer_supported = None


def _probe_single_buffer():
    """Compile+run a tiny kernel with pipeline_mode=pl.Buffered(1)."""
    try:
        def k(x_ref, o_ref):
            o_ref[...] = x_ref[...] * 2.0

        f = pl.pallas_call(
            k,
            out_shape=jax.ShapeDtypeStruct((16, 128), jnp.float32),
            grid=(2,),
            in_specs=[pl.BlockSpec((8, 128), lambda i: (0, 0),
                                   pipeline_mode=pl.Buffered(1))],
            out_specs=pl.BlockSpec((8, 128), lambda i: (i, 0)),
        )
        jax.block_until_ready(f(jnp.ones((8, 128), jnp.float32)))
        return True
    except Exception:
        return False


def _use_single_buffer():
    global _single_buffer_supported
    if _single_buffer_supported is None:
        _single_buffer_supported = _probe_single_buffer()
    return _single_buffer_supported


def _const_spec(shape):
    """BlockSpec for a grid-invariant operand; single-buffered when supported."""
    idx = lambda bb, ss: (0,) * len(shape)
    if _use_single_buffer():
        return pl.BlockSpec(shape, idx, pipeline_mode=pl.Buffered(1))
    return pl.BlockSpec(shape, idx)


def _unroll_for(BB, Hp, chunk):
    # Full unroll only when the per-step live state (~BB*Hp f32 per gate slice)
    # fits comfortably in the 64-vreg (256 KiB) file; otherwise partial unroll.
    if BB * Hp * 4 <= 64 * 1024:
        return True
    return 2 if chunk >= 2 else 1


# ----------------------------------------------------------------------------
# Pallas kernels
# ----------------------------------------------------------------------------
def _sigmoid_t(x):
    # sigmoid(x) == 0.5 * (tanh(x/2) + 1): one EUP push instead of exp + recip.
    return 0.5 * jnp.tanh(0.5 * x) + 0.5


def _lstm_chunk_recurrence(gates_scr, w_hh_ref, h0, c0, store_h,
                           *, hidden, chunk, unroll):
    """Run `chunk` recurrence steps.

    gates_scr: (TS, BB, 4Hp) f32 VMEM scratch holding the precomputed input
               projection (+ bias) for this chunk.
    Gate order along the 4Hp axis (padded layout): [i, f, o | g]; Hp is a
    multiple of 128 so every slice is lane-aligned.  Only h @ w_hh (bf16 MXU,
    f32 accum) remains on the serialized per-step path.
    """
    Hp = hidden

    def step(t, carry):
        h, c = carry
        gates = gates_scr[t] + jnp.dot(h.astype(w_hh_ref.dtype), w_hh_ref[...],
                                       preferred_element_type=jnp.float32)
        sig = _sigmoid_t(gates[:, :3 * Hp])         # [i | f | o] in one pass
        i_g = sig[:, 0 * Hp:1 * Hp]
        f_g = sig[:, 1 * Hp:2 * Hp]
        o_g = sig[:, 2 * Hp:3 * Hp]
        g_g = jnp.tanh(gates[:, 3 * Hp:4 * Hp])
        c_new = f_g * c + i_g * g_g
        h_new = o_g * jnp.tanh(c_new)
        store_h(t, h_new)
        return h_new, c_new

    return lax.fori_loop(0, chunk, step, (h0, c0), unroll=unroll)


def _lstm_hidden_layer_kernel(x_ref, w_ih_ref, w_hh_ref, b_ref,
                              out_ref,
                              gates_scr, h_scr, c_scr,
                              *, hidden, chunk, unroll):
    """One LSTM layer, one (batch_block, seq_chunk) grid step.

    x_ref   : (TS, BB, Dp)   time-major f32 input chunk
    w_ih_ref: (Dp, 4Hp)      pre-transposed, gate-padded bf16 input weights
    w_hh_ref: (Hp, 4Hp)      pre-transposed, gate-padded bf16 recurrent weights
    b_ref   : (1, 4Hp)       combined (b_ih + b_hh), gate-padded, f32
    out_ref : (TS, BB, Hp)   per-step hidden states for this chunk (f32)
    """
    Hp = hidden
    s_idx = pl.program_id(1)          # grid = (batch_blocks, seq_chunks)

    @pl.when(s_idx == 0)
    def _():
        h_scr[...] = jnp.zeros_like(h_scr)
        c_scr[...] = jnp.zeros_like(c_scr)

    TS, BB, Dp = x_ref.shape
    # Hoisted input projection: one big bf16 matmul per chunk, bias folded in.
    x_flat = x_ref[...].reshape(TS * BB, Dp).astype(w_ih_ref.dtype)
    gates_scr[...] = (jnp.dot(x_flat, w_ih_ref[...],
                              preferred_element_type=jnp.float32)
                      + b_ref[...]).reshape(TS, BB, 4 * Hp)

    def store_h(t, h_new):
        out_ref[t] = h_new

    h, c = _lstm_chunk_recurrence(gates_scr, w_hh_ref,
                                  h_scr[...], c_scr[...], store_h,
                                  hidden=Hp, chunk=chunk, unroll=unroll)
    h_scr[...] = h
    c_scr[...] = c


def _lstm_last_layer_kernel(x_ref, w_ih_ref, w_hh_ref, b_ref,
                            w_lin_ref, b_lin_ref,
                            pred_ref,
                            gates_scr, hseq_scr, h_scr, c_scr,
                            *, hidden, chunk, unroll):
    """Last LSTM layer with the output Linear fused in.

    pred_ref: (TS, BB, Op)  predictions for this chunk (Op lane-padded, f32).
    """
    Hp = hidden
    s_idx = pl.program_id(1)

    @pl.when(s_idx == 0)
    def _():
        h_scr[...] = jnp.zeros_like(h_scr)
        c_scr[...] = jnp.zeros_like(c_scr)

    TS, BB, Dp = x_ref.shape
    Op = pred_ref.shape[-1]

    x_flat = x_ref[...].reshape(TS * BB, Dp).astype(w_ih_ref.dtype)
    gates_scr[...] = (jnp.dot(x_flat, w_ih_ref[...],
                              preferred_element_type=jnp.float32)
                      + b_ref[...]).reshape(TS, BB, 4 * Hp)

    def store_h(t, h_new):
        hseq_scr[t] = h_new

    h, c = _lstm_chunk_recurrence(gates_scr, w_hh_ref,
                                  h_scr[...], c_scr[...], store_h,
                                  hidden=Hp, chunk=chunk, unroll=unroll)
    h_scr[...] = h
    c_scr[...] = c

    # Fused output Linear: one (TS*BB, Hp) @ (Hp, Op) bf16 matmul per chunk.
    h_flat = hseq_scr[...].reshape(TS * BB, Hp).astype(w_lin_ref.dtype)
    pred_ref[...] = (jnp.dot(h_flat, w_lin_ref[...],
                             preferred_element_type=jnp.float32)
                     + b_lin_ref[...]).reshape(TS, BB, Op)


# ----------------------------------------------------------------------------
# pallas_call wrappers
# ----------------------------------------------------------------------------
def _lstm_hidden_layer(x_tm, w_ih, w_hh, b, *, seq_chunk, batch_block,
                       compiler_params):
    """x_tm: (T_pad, Bp, Dp) time-major f32 -> (T_pad, Bp, Hp) f32."""
    T_pad, Bp, Dp = x_tm.shape
    Hp = w_hh.shape[0]
    TS, BB = seq_chunk, batch_block
    nb, ns = Bp // BB, T_pad // TS
    unroll = _unroll_for(BB, Hp, TS)

    kernel = functools.partial(_lstm_hidden_layer_kernel,
                               hidden=Hp, chunk=TS, unroll=unroll)
    grid_spec = pltpu.PrefetchScalarGridSpec(
        num_scalar_prefetch=0,
        grid=(nb, ns),
        in_specs=[
            pl.BlockSpec((TS, BB, Dp), lambda bb, ss: (ss, bb, 0)),
            _const_spec((Dp, 4 * Hp)),
            _const_spec((Hp, 4 * Hp)),
            _const_spec((1, 4 * Hp)),
        ],
        out_specs=pl.BlockSpec((TS, BB, Hp), lambda bb, ss: (ss, bb, 0)),
        scratch_shapes=[
            pltpu.VMEM((TS, BB, 4 * Hp), jnp.float32),   # gates_x for the chunk
            pltpu.VMEM((BB, Hp), jnp.float32),           # h carry
            pltpu.VMEM((BB, Hp), jnp.float32),           # c carry
        ],
    )
    return pl.pallas_call(
        kernel,
        out_shape=jax.ShapeDtypeStruct((T_pad, Bp, Hp), jnp.float32),
        grid_spec=grid_spec,
        compiler_params=compiler_params,
    )(x_tm, w_ih, w_hh, b)


def _lstm_last_layer(x_tm, w_ih, w_hh, b, w_lin, b_lin, *, seq_chunk,
                     batch_block, compiler_params):
    """x_tm: (T_pad, Bp, Dp) f32 -> predictions (T_pad, Bp, Op) f32."""
    T_pad, Bp, Dp = x_tm.shape
    Hp = w_hh.shape[0]
    Op = w_lin.shape[-1]
    TS, BB = seq_chunk, batch_block
    nb, ns = Bp // BB, T_pad // TS
    unroll = _unroll_for(BB, Hp, TS)

    kernel = functools.partial(_lstm_last_layer_kernel,
                               hidden=Hp, chunk=TS, unroll=unroll)
    grid_spec = pltpu.PrefetchScalarGridSpec(
        num_scalar_prefetch=0,
        grid=(nb, ns),
        in_specs=[
            pl.BlockSpec((TS, BB, Dp), lambda bb, ss: (ss, bb, 0)),
            _const_spec((Dp, 4 * Hp)),
            _const_spec((Hp, 4 * Hp)),
            _const_spec((1, 4 * Hp)),
            _const_spec((Hp, Op)),
            _const_spec((1, Op)),
        ],
        out_specs=pl.BlockSpec((TS, BB, Op), lambda bb, ss: (ss, bb, 0)),
        scratch_shapes=[
            pltpu.VMEM((TS, BB, 4 * Hp), jnp.float32),   # gates_x for the chunk
            pltpu.VMEM((TS, BB, Hp), jnp.float32),       # per-step hidden states
            pltpu.VMEM((BB, Hp), jnp.float32),           # h carry
            pltpu.VMEM((BB, Hp), jnp.float32),           # c carry
        ],
    )
    return pl.pallas_call(
        kernel,
        out_shape=jax.ShapeDtypeStruct((T_pad, Bp, Op), jnp.float32),
        grid_spec=grid_spec,
        compiler_params=compiler_params,
    )(x_tm, w_ih, w_hh, b, w_lin, b_lin)


# ----------------------------------------------------------------------------
# Weight padding helpers (gate-aligned zero padding; math is unchanged)
# ----------------------------------------------------------------------------
# Padded gate slot s holds PyTorch gate _GATE_PERM[s]; PyTorch order is
# [i, f, g, o] -> padded order [i, f, o | g] so the 3 sigmoid gates are one
# contiguous lane-aligned (BB, 3Hp) slice and tanh gets the last Hp slice.
_GATE_PERM = (0, 1, 3, 2)


def _pad_gate_matrix(w, rows_padded, H, Hp):
    """(d_in, 4H) f32 -> (rows_padded, 4Hp) bf16, gates in 128-aligned slots."""
    d_in = w.shape[0]
    out = jnp.zeros((rows_padded, 4 * Hp), jnp.float32)
    for s, g in enumerate(_GATE_PERM):
        out = out.at[:d_in, s * Hp:s * Hp + H].set(w[:, g * H:(g + 1) * H])
    return out.astype(jnp.bfloat16)


def _pad_gate_vector(v, H, Hp):
    out = jnp.zeros((4 * Hp,), jnp.float32)
    for s, g in enumerate(_GATE_PERM):
        out = out.at[s * Hp:s * Hp + H].set(v[g * H:(g + 1) * H])
    return out.reshape(1, 4 * Hp)                 # bias stays f32


# ----------------------------------------------------------------------------
# Model
# ----------------------------------------------------------------------------
class LSTMGeneratorPallas:
    """Pallas port of LSTMGenerator (stateless forward: h0 = c0 = 0)."""

    def __init__(self, input_size, hidden_layer_size, num_layers, output_size,
                 horizon, key, seq_chunk=None):
        self.input_size = input_size
        self.hidden = hidden_layer_size
        self.num_layers = num_layers
        self.output_size = output_size
        self.horizon = horizon

        H = hidden_layer_size
        self.Hp = _round_up(H, 128)              # lane-aligned hidden size
        self.Op = _round_up(output_size, 128)    # lane-dense prediction width

        # Generation-aware VMEM budget / chunk defaults.
        cap = _vmem_capacity_bytes()
        if cap >= 128 * 1024 * 1024:             # v5e / v6e: 128 MiB physical
            self.vmem_limit = 100 * 1024 * 1024
            default_chunk = 32
        elif cap > 0:                            # v7x: 64 MiB -> leave headroom
            self.vmem_limit = min(52 * 1024 * 1024, int(cap * 0.8))
            default_chunk = 16
        else:                                    # unknown: conservative
            self.vmem_limit = 64 * 1024 * 1024
            default_chunk = 16
        self.seq_chunk = seq_chunk if seq_chunk is not None else default_chunk
        self._compiler_params = pltpu.CompilerParams(
            dimension_semantics=("parallel", "arbitrary"),
            vmem_limit_bytes=self.vmem_limit)

        k = 1.0 / math.sqrt(H)
        keys = jax.random.split(key, 4 * num_layers + 2)

        self.layers = []       # padded bf16 weights used by the kernels
        self.layers_raw = []   # unpadded f32 weights for the pure-JAX reference
        for layer in range(num_layers):
            d_in = input_size if layer == 0 else H
            Dp = _round_up(input_size, 128) if layer == 0 else self.Hp
            k0, k1, k2, k3 = keys[4 * layer:4 * layer + 4]
            # PyTorch stores weight_ih as (4H, d_in); we keep it pre-transposed.
            w_ih_t = jax.random.uniform(k0, (d_in, 4 * H), jnp.float32, -k, k)
            w_hh_t = jax.random.uniform(k1, (H, 4 * H), jnp.float32, -k, k)
            b_ih = jax.random.uniform(k2, (4 * H,), jnp.float32, -k, k)
            b_hh = jax.random.uniform(k3, (4 * H,), jnp.float32, -k, k)
            b = b_ih + b_hh
            self.layers_raw.append((w_ih_t, w_hh_t, b))
            self.layers.append((
                _pad_gate_matrix(w_ih_t, Dp, H, self.Hp),
                _pad_gate_matrix(w_hh_t, self.Hp, H, self.Hp),
                _pad_gate_vector(b, H, self.Hp),
            ))

        kl_w, kl_b = keys[-2], keys[-1]
        self.w_lin_raw = jax.random.uniform(kl_w, (H, output_size),
                                            jnp.float32, -k, k)
        self.b_lin_raw = jax.random.uniform(kl_b, (output_size,),
                                            jnp.float32, -k, k)
        w_lin_pad = jnp.zeros((self.Hp, self.Op), jnp.float32)
        self.w_lin_pad = w_lin_pad.at[:H, :output_size].set(
            self.w_lin_raw).astype(jnp.bfloat16)
        b_lin_pad = jnp.zeros((1, self.Op), jnp.float32)
        self.b_lin_pad = b_lin_pad.at[0, :output_size].set(self.b_lin_raw)

    # rough per-grid-step VMEM footprint (bytes), used to shrink the chunk
    def _vmem_estimate(self, TS, BB, Dp):
        Hp, Op = self.Hp, self.Op
        f32, bf16 = 4, 2
        x_blk = TS * BB * Dp * f32
        out_blk = TS * BB * max(Hp, Op) * f32
        gates = TS * BB * 4 * Hp * f32
        hseq = TS * BB * Hp * f32
        carry = 2 * BB * Hp * f32
        wbuf = 1 if _use_single_buffer() else 2
        weights = (wbuf * ((Dp + Hp) * 4 * Hp * bf16 + Hp * Op * bf16)
                   + 4 * Hp * f32 + Op * f32)
        return 2 * (x_blk + out_blk) + gates + hseq + carry + weights

    def __call__(self, x):
        """x: (batch, seq, input_size) -> (batch, min(horizon, seq), output_size)."""
        B, S, D = x.shape
        H, Hp, O, Op = self.hidden, self.Hp, self.output_size, self.Op
        T = min(self.horizon, S)                 # horizon slice of the output

        Bp = _round_up(B, 8)                     # sublane-aligned batch
        # Batch block: keep the full padded batch in one block (it is the MXU
        # M dim); only split when large enough that each block stays MXU-wide
        # and the "parallel" grid axis can use a second TensorCore (v7x).
        if Bp <= 256:
            BB = Bp
        else:
            BB = 256
            Bp = _round_up(Bp, BB)

        Dp0 = self.layers[0][0].shape[0]         # padded input feature dim
        Dmax = max(Dp0, Hp)

        # The whole stack only needs the first T_pad timesteps (h0=c0=0 and the
        # LSTM is causal), so truncate before ANY layer runs.
        ts = max(1, min(self.seq_chunk, T))
        while ts > 8 and self._vmem_estimate(ts, BB, Dmax) > 0.8 * self.vmem_limit:
            ts //= 2
        n_chunks = -(-T // ts)
        TS = -(-T // n_chunks)                   # balanced chunks, minimal waste
        T_pad = n_chunks * TS

        S_used = min(S, T_pad)
        x_tm = jnp.transpose(x[:, :S_used, :].astype(jnp.float32), (1, 0, 2))
        x_tm = jnp.pad(x_tm, ((0, T_pad - S_used), (0, Bp - B), (0, Dp0 - D)))

        layer_in = x_tm
        for (w_ih, w_hh, b) in self.layers[:-1]:
            layer_in = _lstm_hidden_layer(layer_in, w_ih, w_hh, b,
                                          seq_chunk=TS, batch_block=BB,
                                          compiler_params=self._compiler_params)

        w_ih, w_hh, b = self.layers[-1]
        pred_pad = _lstm_last_layer(layer_in, w_ih, w_hh, b,
                                    self.w_lin_pad, self.b_lin_pad,
                                    seq_chunk=TS, batch_block=BB,
                                    compiler_params=self._compiler_params)

        # Slice padding away BEFORE the transpose so the epilogue copy only
        # touches real data (Op is 128-wide padded).
        pred = jnp.transpose(pred_pad[:T, :B, :O], (1, 0, 2))
        return pred


# ----------------------------------------------------------------------------
# Pure-JAX reference for a sanity check (unpadded f32 weights)
# ----------------------------------------------------------------------------
def _reference_forward(model, x):
    H = model.hidden
    B, S, _ = x.shape
    layer_in = jnp.transpose(x.astype(jnp.float32), (1, 0, 2))
    for (w_ih_t, w_hh_t, b) in model.layers_raw:
        h = jnp.zeros((B, H), jnp.float32)
        c = jnp.zeros((B, H), jnp.float32)
        outs = []
        for t in range(S):
            gates = layer_in[t] @ w_ih_t + h @ w_hh_t + b
            i_g = jax.nn.sigmoid(gates[:, 0 * H:1 * H])
            f_g = jax.nn.sigmoid(gates[:, 1 * H:2 * H])
            g_g = jnp.tanh(gates[:, 2 * H:3 * H])
            o_g = jax.nn.sigmoid(gates[:, 3 * H:4 * H])
            c = f_g * c + i_g * g_g
            h = o_g * jnp.tanh(c)
            outs.append(h)
        layer_in = jnp.stack(outs, axis=0)
    lstm_out = jnp.transpose(layer_in, (1, 0, 2))
    pred = lstm_out @ model.w_lin_raw + model.b_lin_raw
    return pred[:, :model.horizon, :]


# ----------------------------------------------------------------------------
if __name__ == "__main__":
    # Small shapes consistent with the module's forward.
    batch, seq = 2, 8
    input_size, hidden, num_layers, output_size, horizon = 8, 32, 2, 4, 5

    key = jax.random.PRNGKey(0)
    k_params, k_x = jax.random.split(key)
    model = LSTMGeneratorPallas(input_size, hidden, num_layers, output_size,
                                horizon, k_params)

    x = jax.random.normal(k_x, (batch, seq, input_size), dtype=jnp.float32)

    pred = jax.block_until_ready(model(x))
    assert pred.shape == (batch, horizon, output_size), pred.shape

    ref = _reference_forward(model, x)
    max_err = float(jnp.max(jnp.abs(pred - ref)))
    # bf16 weights on the MXU path (f32 accumulation) -> ~1e-2-level drift
    # vs the all-f32 reference.
    assert max_err < 2e-2, f"mismatch vs reference: {max_err}"

    print("KERNEL_OK")
</pallas_src>

<mosaic_0001>
module attributes {stable_mosaic.version = 11 : i64} {
  func.func @k(%arg0: i32, %arg1: memref<8x128xf32, #tpu.memory_space<vmem>>, %arg2: memref<8x128xf32, #tpu.memory_space<vmem>>) attributes {dimension_semantics = [#tpu.dimension_semantics<arbitrary>], iteration_bounds = array<i64: 2>, scalar_prefetch = 0 : i64, scratch_operands = 0 : i64, tpu.core_type = #tpu.core_type<tc>, window_params = [{pipeline_mode = #tpu.pipeline_mode<synchronous>, transform_indices = @transform_0, window_bounds = array<i64: 8, 128>}, {transform_indices = @transform_1, window_bounds = array<i64: 8, 128>}]} {
    %c0 = arith.constant 0 : index
    %c0_0 = arith.constant 0 : index
    %0 = vector.load %arg1[%c0, %c0_0] : memref<8x128xf32, #tpu.memory_space<vmem>>, vector<8x128xf32>
    %cst = arith.constant 2.000000e+00 : f32
    %1 = vector.broadcast %cst : f32 to vector<8x128xf32>
    %2 = arith.mulf %0, %1 : vector<8x128xf32>
    %c0_1 = arith.constant 0 : index
    %c0_2 = arith.constant 0 : index
    %3 = vector.load %arg2[%c0_1, %c0_2] : memref<8x128xf32, #tpu.memory_space<vmem>>, vector<8x128xf32>
    tpu.vector_store %arg2[%c0_1, %c0_2], %2 {strides = array<i32>} : memref<8x128xf32, #tpu.memory_space<vmem>>, vector<8x128xf32>,
    return
  }
  func.func @transform_0(%arg0: i32) -> (i32, i32) {
    %c0_i32 = arith.constant 0 : i32
    %c0_i32_0 = arith.constant 0 : i32
    %c0_i32_1 = arith.constant 0 : i32
    return %c0_i32, %c0_i32_0 : i32, i32
  }
  func.func @transform_1(%arg0: i32) -> (i32, i32) {
    %c0_i32 = arith.constant 0 : i32
    %c0_i32_0 = arith.constant 0 : i32
    return %arg0, %c0_i32 : i32, i32
  }
}

module attributes {stable_mosaic.version = 11 : i64} {
  func.func @_lstm_hidden_layer_kernel(%arg0: i32, %arg1: i32, %arg2: memref<5x8x128xf32, #tpu.memory_space<vmem>>, %arg3: memref<128x512xbf16, #tpu.memory_space<vmem>>, %arg4: memref<128x512xbf16, #tpu.memory_space<vmem>>, %arg5: memref<1x512xf32, #tpu.memory_space<vmem>>, %arg6: memref<5x8x128xf32, #tpu.memory_space<vmem>>, %arg7: memref<5x8x512xf32, #tpu.memory_space<vmem>>, %arg8: memref<8x128xf32, #tpu.memory_space<vmem>>, %arg9: memref<8x128xf32, #tpu.memory_space<vmem>>) attributes {dimension_semantics = [#tpu.dimension_semantics<parallel>, #tpu.dimension_semantics<arbitrary>], iteration_bounds = array<i64: 1, 1>, scalar_prefetch = 0 : i64, scratch_operands = 3 : i64, tpu.core_type = #tpu.core_type<tc>, window_params = [{transform_indices = @transform_0, window_bounds = array<i64: 5, 8, 128>}, {pipeline_mode = #tpu.pipeline_mode<synchronous>, transform_indices = @transform_1, window_bounds = array<i64: 128, 512>}, {pipeline_mode = #tpu.pipeline_mode<synchronous>, transform_indices = @transform_2, window_bounds = array<i64: 128, 512>}, {pipeline_mode = #tpu.pipeline_mode<synchronous>, transform_indices = @transform_3, window_bounds = array<i64: 1, 512>}, {transform_indices = @transform_4, window_bounds = array<i64: 5, 8, 128>}]} {
    %c0_i32 = arith.constant 0 : i32
    %0 = arith.cmpi eq, %arg1, %c0_i32 : i32
    %1 = arith.extui %0 : i1 to i32
    %c0_i32_0 = arith.constant 0 : i32
    %2 = arith.cmpi ne, %1, %c0_i32_0 : i32
    scf.if %2 {
      %cst_69 = arith.constant 0.000000e+00 : f32
      %162 = vector.broadcast %cst_69 : f32 to vector<8x128xf32>
      %c0_70 = arith.constant 0 : index
      %c0_71 = arith.constant 0 : index
      %163 = vector.load %arg8[%c0_70, %c0_71] : memref<8x128xf32, #tpu.memory_space<vmem>>, vector<8x128xf32>
      tpu.vector_store %arg8[%c0_70, %c0_71], %162 {strides = array<i32>} : memref<8x128xf32, #tpu.memory_space<vmem>>, vector<8x128xf32>,
      %cst_72 = arith.constant 0.000000e+00 : f32
      %164 = vector.broadcast %cst_72 : f32 to vector<8x128xf32>
      %c0_73 = arith.constant 0 : index
      %c0_74 = arith.constant 0 : index
      %165 = vector.load %arg9[%c0_73, %c0_74] : memref<8x128xf32, #tpu.memory_space<vmem>>, vector<8x128xf32>
      tpu.vector_store %arg9[%c0_73, %c0_74], %164 {strides = array<i32>} : memref<8x128xf32, #tpu.memory_space<vmem>>, vector<8x128xf32>,
    } else {
    }
    %c0 = arith.constant 0 : index
    %c0_1 = arith.constant 0 : index
    %c0_2 = arith.constant 0 : index
    %3 = vector.load %arg2[%c0, %c0_1, %c0_2] : memref<5x8x128xf32, #tpu.memory_space<vmem>>, vector<5x8x128xf32>
    %4 = vector.shape_cast %3 : vector<5x8x128xf32> to vector<40x128xf32>
    %5 = arith.truncf %4 : vector<40x128xf32> to vector<40x128xbf16>
    %c0_3 = arith.constant 0 : index
    %c0_4 = arith.constant 0 : index
    %6 = vector.load %arg3[%c0_3, %c0_4] : memref<128x512xbf16, #tpu.memory_space<vmem>>, vector<128x512xbf16>
    %cst = arith.constant dense<0.000000e+00> : vector<40x512xf32>
    %7 = tpu.matmul %5, %6, %cst {dimension_numbers = #tpu.dot_dimension_numbers<[1], [0], [0], [1], [0, 0, 1, 1], [], []>} : vector<40x128xbf16>, vector<128x512xbf16>, vector<40x512xf32> -> vector<40x512xf32>
    %c0_5 = arith.constant 0 : index
    %c0_6 = arith.constant 0 : index
    %8 = vector.load %arg5[%c0_5, %c0_6] : memref<1x512xf32, #tpu.memory_space<vmem>>, vector<1x512xf32>
    %9 = vector.broadcast %8 : vector<1x512xf32> to vector<40x512xf32>
    %10 = arith.addf %7, %9 : vector<40x512xf32>
    %11 = vector.shape_cast %10 : vector<40x512xf32> to vector<5x8x512xf32>
    %c0_7 = arith.constant 0 : index
    %c0_8 = arith.constant 0 : index
    %c0_9 = arith.constant 0 : index
    %12 = vector.load %arg7[%c0_7, %c0_8, %c0_9] : memref<5x8x512xf32, #tpu.memory_space<vmem>>, vector<5x8x512xf32>
    tpu.vector_store %arg7[%c0_7, %c0_8, %c0_9], %11 {strides = array<i32>} : memref<5x8x512xf32, #tpu.memory_space<vmem>>, vector<5x8x512xf32>,
    %c0_10 = arith.constant 0 : index
    %c0_11 = arith.constant 0 : index
    %13 = vector.load %arg8[%c0_10, %c0_11] : memref<8x128xf32, #tpu.memory_space<vmem>>, vector<8x128xf32>
    %c0_12 = arith.constant 0 : index
    %c0_13 = arith.constant 0 : index
    %14 = vector.load %arg9[%c0_12, %c0_13] : memref<8x128xf32, #tpu.memory_space<vmem>>, vector<8x128xf32>
    %c0_i32_14 = arith.constant 0 : i32
    %15 = arith.index_cast %c0_i32_14 : i32 to index
    %c0_15 = arith.constant 0 : index
    %c0_16 = arith.constant 0 : index
    %16 = vector.load %arg7[%15, %c0_15, %c0_16] : memref<5x8x512xf32, #tpu.memory_space<vmem>>, vector<1x8x512xf32>
    %17 = vector.shape_cast %16 : vector<1x8x512xf32> to vector<8x512xf32>
    %18 = arith.truncf %13 : vector<8x128xf32> to vector<8x128xbf16>
    %c0_17 = arith.constant 0 : index
    %c0_18 = arith.constant 0 : index
    %19 = vector.load %arg4[%c0_17, %c0_18] : memref<128x512xbf16, #tpu.memory_space<vmem>>, vector<128x512xbf16>
    %cst_19 = arith.constant dense<0.000000e+00> : vector<8x512xf32>
    %20 = tpu.matmul %18, %19, %cst_19 {dimension_numbers = #tpu.dot_dimension_numbers<[1], [0], [0], [1], [0, 0, 1, 1], [], []>} : vector<8x128xbf16>, vector<128x512xbf16>, vector<8x512xf32> -> vector<8x512xf32>
    %21 = arith.addf %17, %20 : vector<8x512xf32>
    %22 = vector.extract_strided_slice %21 {offsets = [0, 0], sizes = [8, 384], strides = [1, 1]} : vector<8x512xf32> to vector<8x384xf32>
    %cst_20 = arith.constant 5.000000e-01 : f32
    %23 = vector.broadcast %cst_20 : f32 to vector<8x384xf32>
    %24 = arith.mulf %23, %22 : vector<8x384xf32>
    %25 = math.tanh %24 : vector<8x384xf32>
    %cst_21 = arith.constant 5.000000e-01 : f32
    %26 = vector.broadcast %cst_21 : f32 to vector<8x384xf32>
    %27 = arith.mulf %26, %25 : vector<8x384xf32>
    %cst_22 = arith.constant 5.000000e-01 : f32
    %28 = vector.broadcast %cst_22 : f32 to vector<8x384xf32>
    %29 = arith.addf %27, %28 : vector<8x384xf32>
    %30 = vector.extract_strided_slice %29 {offsets = [0, 0], sizes = [8, 128], strides = [1, 1]} : vector<8x384xf32> to vector<8x128xf32>
    %31 = vector.extract_strided_slice %29 {offsets = [0, 128], sizes = [8, 128], strides = [1, 1]} : vector<8x384xf32> to vector<8x128xf32>
    %32 = vector.extract_strided_slice %29 {offsets = [0, 256], sizes = [8, 128], strides = [1, 1]} : vector<8x384xf32> to vector<8x128xf32>
    %33 = vector.extract_strided_slice %21 {offsets = [0, 384], sizes = [8, 128], strides = [1, 1]} : vector<8x512xf32> to vector<8x128xf32>
    %34 = math.tanh %33 : vector<8x128xf32>
    %35 = arith.mulf %31, %14 : vector<8x128xf32>
    %36 = arith.mulf %30, %34 : vector<8x128xf32>
    %37 = arith.addf %35, %36 : vector<8x128xf32>
    %38 = math.tanh %37 : vector<8x128xf32>
    %39 = arith.mulf %32, %38 : vector<8x128xf32>
    %40 = arith.index_cast %c0_i32_14 : i32 to index
    %c0_23 = arith.constant 0 : index
    %c0_24 = arith.constant 0 : index
    %41 = vector.load %arg6[%40, %c0_23, %c0_24] : memref<5x8x128xf32, #tpu.memory_space<vmem>>, vector<1x8x128xf32>
    %42 = vector.shape_cast %41 : vector<1x8x128xf32> to vector<8x128xf32>
    %43 = vector.shape_cast %39 : vector<8x128xf32> to vector<1x8x128xf32>
    tpu.vector_store %arg6[%40, %c0_23, %c0_24], %43 {strides = array<i32>} : memref<5x8x128xf32, #tpu.memory_space<vmem>>, vector<1x8x128xf32>,
    %c1_i32 = arith.constant 1 : i32
    %44 = arith.index_cast %c1_i32 : i32 to index
    %c0_25 = arith.constant 0 : index
    %c0_26 = arith.constant 0 : index
    %45 = vector.load %arg7[%44, %c0_25, %c0_26] : memref<5x8x512xf32, #tpu.memory_space<vmem>>, vector<1x8x512xf32>
    %46 = vector.shape_cast %45 : vector<1x8x512xf32> to vector<8x512xf32>
    %47 = arith.truncf %39 : vector<8x128xf32> to vector<8x128xbf16>
    %c0_27 = arith.constant 0 : index
    %c0_28 = arith.constant 0 : index
    %48 = vector.load %arg4[%c0_27, %c0_28] : memref<128x512xbf16, #tpu.memory_space<vmem>>, vector<128x512xbf16>
    %cst_29 = arith.constant dense<0.000000e+00> : vector<8x512xf32>
    %49 = tpu.matmul %47, %48, %cst_29 {dimension_numbers = #tpu.dot_dimension_numbers<[1], [0], [0], [1], [0, 0, 1, 1], [], []>} : vector<8x128xbf16>, vector<128x512xbf16>, vector<8x512xf32> -> vector<8x512xf32>
    %50 = arith.addf %46, %49 : vector<8x512xf32>
    %51 = vector.extract_strided_slice %50 {offsets = [0, 0], sizes = [8, 384], strides = [1, 1]} : vector<8x512xf32> to vector<8x384xf32>
    %cst_30 = arith.constant 5.000000e-01 : f32
    %52 = vector.broadcast %cst_30 : f32 to vector<8x384xf32>
    %53 = arith.mulf %52, %51 : vector<8x384xf32>
    %54 = math.tanh %53 : vector<8x384xf32>
    %cst_31 = arith.constant 5.000000e-01 : f32
    %55 = vector.broadcast %cst_31 : f32 to vector<8x384xf32>
    %56 = arith.mulf %55, %54 : vector<8x384xf32>
    %cst_32 = arith.constant 5.000000e-01 : f32
    %57 = vector.broadcast %cst_32 : f32 to vector<8x384xf32>
    %58 = arith.addf %56, %57 : vector<8x384xf32>
    %59 = vector.extract_strided_slice %58 {offsets = [0, 0], sizes = [8, 128], strides = [1, 1]} : vector<8x384xf32> to vector<8x128xf32>
    %60 = vector.extract_strided_slice %58 {offsets = [0, 128], sizes = [8, 128], strides = [1, 1]} : vector<8x384xf32> to vector<8x128xf32>
    %61 = vector.extract_strided_slice %58 {offsets = [0, 256], sizes = [8, 128], strides = [1, 1]} : vector<8x384xf32> to vector<8x128xf32>
    %62 = vector.extract_strided_slice %50 {offsets = [0, 384], sizes = [8, 128], strides = [1, 1]} : vector<8x512xf32> to vector<8x128xf32>
    %63 = math.tanh %62 : vector<8x128xf32>
    %64 = arith.mulf %60, %37 : vector<8x128xf32>
    %65 = arith.mulf %59, %63 : vector<8x128xf32>
    %66 = arith.addf %64, %65 : vector<8x128xf32>
    %67 = math.tanh %66 : vector<8x128xf32>
    %68 = arith.mulf %61, %67 : vector<8x128xf32>
    %69 = arith.index_cast %c1_i32 : i32 to index
    %c0_33 = arith.constant 0 : index
    %c0_34 = arith.constant 0 : index
    %70 = vector.load %arg6[%69, %c0_33, %c0_34] : memref<5x8x128xf32, #tpu.memory_space<vmem>>, vector<1x8x128xf32>
    %71 = vector.shape_cast %70 : vector<1x8x128xf32> to vector<8x128xf32>
    %72 = vector.shape_cast %68 : vector<8x128xf32> to vector<1x8x128xf32>
    tpu.vector_store %arg6[%69, %c0_33, %c0_34], %72 {strides = array<i32>} : memref<5x8x128xf32, #tpu.memory_space<vmem>>, vector<1x8x128xf32>,
    %c2_i32 = arith.constant 2 : i32
    %73 = arith.index_cast %c2_i32 : i32 to index
    %c0_35 = arith.constant 0 : index
    %c0_36 = arith.constant 0 : index
    %74 = vector.load %arg7[%73, %c0_35, %c0_36] : memref<5x8x512xf32, #tpu.memory_space<vmem>>, vector<1x8x512xf32>
    %75 = vector.shape_cast %74 : vector<1x8x512xf32> to vector<8x512xf32>
    %76 = arith.truncf %68 : vector<8x128xf32> to vector<8x128xbf16>
    %c0_37 = arith.constant 0 : index
    %c0_38 = arith.constant 0 : index
    %77 = vector.load %arg4[%c0_37, %c0_38] : memref<128x512xbf16, #tpu.memory_space<vmem>>, vector<128x512xbf16>
    %cst_39 = arith.constant dense<0.000000e+00> : vector<8x512xf32>
    %78 = tpu.matmul %76, %77, %cst_39 {dimension_numbers = #tpu.dot_dimension_numbers<[1], [0], [0], [1], [0, 0, 1, 1], [], []>} : vector<8x128xbf16>, vector<128x512xbf16>, vector<8x512xf32> -> vector<8x512xf32>
    %79 = arith.addf %75, %78 : vector<8x512xf32>
    %80 = vector.extract_strided_slice %79 {offsets = [0, 0], sizes = [8, 384], strides = [1, 1]} : vector<8x512xf32> to vector<8x384xf32>
    %cst_40 = arith.constant 5.000000e-01 : f32
    %81 = vector.broadcast %cst_40 : f32 to vector<8x384xf32>
    %82 = arith.mulf %81, %80 : vector<8x384xf32>
    %83 = math.tanh %82 : vector<8x384xf32>
    %cst_41 = arith.constant 5.000000e-01 : f32
    %84 = vector.broadcast %cst_41 : f32 to vector<8x384xf32>
    %85 = arith.mulf %84, %83 : vector<8x384xf32>
    %cst_42 = arith.constant 5.000000e-01 : f32
    %86 = vector.broadcast %cst_42 : f32 to vector<8x384xf32>
    %87 = arith.addf %85, %86 : vector<8x384xf32>
    %88 = vector.extract_strided_slice %87 {offsets = [0, 0], sizes = [8, 128], strides = [1, 1]} : vector<8x384xf32> to vector<8x128xf32>
    %89 = vector.extract_strided_slice %87 {offsets = [0, 128], sizes = [8, 128], strides = [1, 1]} : vector<8x384xf32> to vector<8x128xf32>
    %90 = vector.extract_strided_slice %87 {offsets = [0, 256], sizes = [8, 128], strides = [1, 1]} : vector<8x384xf32> to vector<8x128xf32>
    %91 = vector.extract_strided_slice %79 {offsets = [0, 384], sizes = [8, 128], strides = [1, 1]} : vector<8x512xf32> to vector<8x128xf32>
    %92 = math.tanh %91 : vector<8x128xf32>
    %93 = arith.mulf %89, %66 : vector<8x128xf32>
    %94 = arith.mulf %88, %92 : vector<8x128xf32>
    %95 = arith.addf %93, %94 : vector<8x128xf32>
    %96 = math.tanh %95 : vector<8x128xf32>
    %97 = arith.mulf %90, %96 : vector<8x128xf32>
    %98 = arith.index_cast %c2_i32 : i32 to index
    %c0_43 = arith.constant 0 : index
    %c0_44 = arith.constant 0 : index
    %99 = vector.load %arg6[%98, %c0_43, %c0_44] : memref<5x8x128xf32, #tpu.memory_space<vmem>>, vector<1x8x128xf32>
    %100 = vector.shape_cast %99 : vector<1x8x128xf32> to vector<8x128xf32>
    %101 = vector.shape_cast %97 : vector<8x128xf32> to vector<1x8x128xf32>
    tpu.vector_store %arg6[%98, %c0_43, %c0_44], %101 {strides = array<i32>} : memref<5x8x128xf32, #tpu.memory_space<vmem>>, vector<1x8x128xf32>,
    %c3_i32 = arith.constant 3 : i32
    %102 = arith.index_cast %c3_i32 : i32 to index
    %c0_45 = arith.constant 0 : index
    %c0_46 = arith.constant 0 : index
    %103 = vector.load %arg7[%102, %c0_45, %c0_46] : memref<5x8x512xf32, #tpu.memory_space<vmem>>, vector<1x8x512xf32>
    %104 = vector.shape_cast %103 : vector<1x8x512xf32> to vector<8x512xf32>
    %105 = arith.truncf %97 : vector<8x128xf32> to vector<8x128xbf16>
    %c0_47 = arith.constant 0 : index
    %c0_48 = arith.constant 0 : index
    %106 = vector.load %arg4[%c0_47, %c0_48] : memref<128x512xbf16, #tpu.memory_space<vmem>>, vector<128x512xbf16>
    %cst_49 = arith.constant dense<0.000000e+00> : vector<8x512xf32>
    %107 = tpu.matmul %105, %106, %cst_49 {dimension_numbers = #tpu.dot_dimension_numbers<[1], [0], [0], [1], [0, 0, 1, 1], [], []>} : vector<8x128xbf16>, vector<128x512xbf16>, vector<8x512xf32> -> vector<8x512xf32>
    %108 = arith.addf %104, %107 : vector<8x512xf32>
    %109 = vector.extract_strided_slice %108 {offsets = [0, 0], sizes = [8, 384], strides = [1, 1]} : vector<8x512xf32> to vector<8x384xf32>
    %cst_50 = arith.constant 5.000000e-01 : f32
    %110 = vector.broadcast %cst_50 : f32 to vector<8x384xf32>
    %111 = arith.mulf %110, %109 : vector<8x384xf32>
    %112 = math.tanh %111 : vector<8x384xf32>
    %cst_51 = arith.constant 5.000000e-01 : f32
    %113 = vector.broadcast %cst_51 : f32 to vector<8x384xf32>
    %114 = arith.mulf %113, %112 : vector<8x384xf32>
    %cst_52 = arith.constant 5.000000e-01 : f32
    %115 = vector.broadcast %cst_52 : f32 to vector<8x384xf32>
    %116 = arith.addf %114, %115 : vector<8x384xf32>
    %117 = vector.extract_strided_slice %116 {offsets = [0, 0], sizes = [8, 128], strides = [1, 1]} : vector<8x384xf32> to vector<8x128xf32>
    %118 = vector.extract_strided_slice %116 {offsets = [0, 128], sizes = [8, 128], strides = [1, 1]} : vector<8x384xf32> to vector<8x128xf32>
    %119 = vector.extract_strided_slice %116 {offsets = [0, 256], sizes = [8, 128], strides = [1, 1]} : vector<8x384xf32> to vector<8x128xf32>
    %120 = vector.extract_strided_slice %108 {offsets = [0, 384], sizes = [8, 128], strides = [1, 1]} : vector<8x512xf32> to vector<8x128xf32>
    %121 = math.tanh %120 : vector<8x128xf32>
    %122 = arith.mulf %118, %95 : vector<8x128xf32>
    %123 = arith.mulf %117, %121 : vector<8x128xf32>
    %124 = arith.addf %122, %123 : vector<8x128xf32>
    %125 = math.tanh %124 : vector<8x128xf32>
    %126 = arith.mulf %119, %125 : vector<8x128xf32>
    %127 = arith.index_cast %c3_i32 : i32 to index
    %c0_53 = arith.constant 0 : index
    %c0_54 = arith.constant 0 : index
    %128 = vector.load %arg6[%127, %c0_53, %c0_54] : memref<5x8x128xf32, #tpu.memory_space<vmem>>, vector<1x8x128xf32>
    %129 = vector.shape_cast %128 : vector<1x8x128xf32> to vector<8x128xf32>
    %130 = vector.shape_cast %126 : vector<8x128xf32> to vector<1x8x128xf32>
    tpu.vector_store %arg6[%127, %c0_53, %c0_54], %130 {strides = array<i32>} : memref<5x8x128xf32, #tpu.memory_space<vmem>>, vector<1x8x128xf32>,
    %c4_i32 = arith.constant 4 : i32
    %131 = arith.index_cast %c4_i32 : i32 to index
    %c0_55 = arith.constant 0 : index
    %c0_56 = arith.constant 0 : index
    %132 = vector.load %arg7[%131, %c0_55, %c0_56] : memref<5x8x512xf32, #tpu.memory_space<vmem>>, vector<1x8x512xf32>
    %133 = vector.shape_cast %132 : vector<1x8x512xf32> to vector<8x512xf32>
    %134 = arith.truncf %126 : vector<8x128xf32> to vector<8x128xbf16>
    %c0_57 = arith.constant 0 : index
    %c0_58 = arith.constant 0 : index
    %135 = vector.load %arg4[%c0_57, %c0_58] : memref<128x512xbf16, #tpu.memory_space<vmem>>, vector<128x512xbf16>
    %cst_59 = arith.constant dense<0.000000e+00> : vector<8x512xf32>
    %136 = tpu.matmul %134, %135, %cst_59 {dimension_numbers = #tpu.dot_dimension_numbers<[1], [0], [0], [1], [0, 0, 1, 1], [], []>} : vector<8x128xbf16>, vector<128x512xbf16>, vector<8x512xf32> -> vector<8x512xf32>
    %137 = arith.addf %133, %136 : vector<8x512xf32>
    %138 = vector.extract_strided_slice %137 {offsets = [0, 0], sizes = [8, 384], strides = [1, 1]} : vector<8x512xf32> to vector<8x384xf32>
    %cst_60 = arith.constant 5.000000e-01 : f32
    %139 = vector.broadcast %cst_60 : f32 to vector<8x384xf32>
    %140 = arith.mulf %139, %138 : vector<8x384xf32>
    %141 = math.tanh %140 : vector<8x384xf32>
    %cst_61 = arith.constant 5.000000e-01 : f32
    %142 = vector.broadcast %cst_61 : f32 to vector<8x384xf32>
    %143 = arith.mulf %142, %141 : vector<8x384xf32>
    %cst_62 = arith.constant 5.000000e-01 : f32
    %144 = vector.broadcast %cst_62 : f32 to vector<8x384xf32>
    %145 = arith.addf %143, %144 : vector<8x384xf32>
    %146 = vector.extract_strided_slice %145 {offsets = [0, 0], sizes = [8, 128], strides = [1, 1]} : vector<8x384xf32> to vector<8x128xf32>
    %147 = vector.extract_strided_slice %145 {offsets = [0, 128], sizes = [8, 128], strides = [1, 1]} : vector<8x384xf32> to vector<8x128xf32>
    %148 = vector.extract_strided_slice %145 {offsets = [0, 256], sizes = [8, 128], strides = [1, 1]} : vector<8x384xf32> to vector<8x128xf32>
    %149 = vector.extract_strided_slice %137 {offsets = [0, 384], sizes = [8, 128], strides = [1, 1]} : vector<8x512xf32> to vector<8x128xf32>
    %150 = math.tanh %149 : vector<8x128xf32>
    %151 = arith.mulf %147, %124 : vector<8x128xf32>
    %152 = arith.mulf %146, %150 : vector<8x128xf32>
    %153 = arith.addf %151, %152 : vector<8x128xf32>
    %154 = math.tanh %153 : vector<8x128xf32>
    %155 = arith.mulf %148, %154 : vector<8x128xf32>
    %156 = arith.index_cast %c4_i32 : i32 to index
    %c0_63 = arith.constant 0 : index
    %c0_64 = arith.constant 0 : index
    %157 = vector.load %arg6[%156, %c0_63, %c0_64] : memref<5x8x128xf32, #tpu.memory_space<vmem>>, vector<1x8x128xf32>
    %158 = vector.shape_cast %157 : vector<1x8x128xf32> to vector<8x128xf32>
    %159 = vector.shape_cast %155 : vector<8x128xf32> to vector<1x8x128xf32>
    tpu.vector_store %arg6[%156, %c0_63, %c0_64], %159 {strides = array<i32>} : memref<5x8x128xf32, #tpu.memory_space<vmem>>, vector<1x8x128xf32>,
    %c5_i32 = arith.constant 5 : i32
    %c0_65 = arith.constant 0 : index
    %c0_66 = arith.constant 0 : index
    %160 = vector.load %arg8[%c0_65, %c0_66] : memref<8x128xf32, #tpu.memory_space<vmem>>, vector<8x128xf32>
    tpu.vector_store %arg8[%c0_65, %c0_66], %155 {strides = array<i32>} : memref<8x128xf32, #tpu.memory_space<vmem>>, vector<8x128xf32>,
    %c0_67 = arith.constant 0 : index
    %c0_68 = arith.constant 0 : index
    %161 = vector.load %arg9[%c0_67, %c0_68] : memref<8x128xf32, #tpu.memory_space<vmem>>, vector<8x128xf32>
    tpu.vector_store %arg9[%c0_67, %c0_68], %153 {strides = array<i32>} : memref<8x128xf32, #tpu.memory_space<vmem>>, vector<8x128xf32>,
    return
  }
  func.func @transform_0(%arg0: i32, %arg1: i32) -> (i32, i32, i32) {
    %c0_i32 = arith.constant 0 : i32
    %c0_i32_0 = arith.constant 0 : i32
    return %arg1, %arg0, %c0_i32 : i32, i32, i32
  }
  func.func @transform_1(%arg0: i32, %arg1: i32) -> (i32, i32) {
    %c0_i32 = arith.constant 0 : i32
    %c0_i32_0 = arith.constant 0 : i32
    %c0_i32_1 = arith.constant 0 : i32
    return %c0_i32, %c0_i32_0 : i32, i32
  }
  func.func @transform_2(%arg0: i32, %arg1: i32) -> (i32, i32) {
    %c0_i32 = arith.constant 0 : i32
    %c0_i32_0 = arith.constant 0 : i32
    %c0_i32_1 = arith.constant 0 : i32
    return %c0_i32, %c0_i32_0 : i32, i32
  }
  func.func @transform_3(%arg0: i32, %arg1: i32) -> (i32, i32) {
    %c0_i32 = arith.constant 0 : i32
    %c0_i32_0 = arith.constant 0 : i32
    %c0_i32_1 = arith.constant 0 : i32
    return %c0_i32, %c0_i32_0 : i32, i32
  }
  func.func @transform_4(%arg0: i32, %arg1: i32) -> (i32, i32, i32) {
    %c0_i32 = arith.constant 0 : i32
    %c0_i32_0 = arith.constant 0 : i32
    return %arg1, %arg0, %c0_i32 : i32, i32, i32
  }
}

</mosaic_0001>

<bundles_post_ra>
// kernel: tpu_custom_call.1
= control target key start
LH: loop header
LB: loop body
LE: loop exit
PB: predicated region body
PF: predicated region fallthrough
CT: control target
= control target key end

     0   :  { %6 = vsyncpa [#allocation3], 0  ;;  %s441_s0 = inlined_call_operand.hbm [shape: f32[8,128], index: 0, kind: input, shape index: {}]   ;;  %s442_s1 = inlined_call_operand.hbm [shape: f32[16,128], index: 1, kind: output, shape index: {}]  }
   0x1   :  { %7 = vsyncpa [#allocation4], 0 }
   0x2   :  { %9 = vsyncpa [#allocation4 + $0x1], 0  ;;  %s357_s6 = smov 0   ;;  %s359_s7 = smov 0  }
   0x3   :  { %s361_s8 = smov 0   ;;  %s363_s9 = smov 0  }
   0x4 LB: > { %s378_s10 = sadd.s32 4294967295, %s344_s9   ;;  %s188_s11 = sadd.s32 4294967294, %s344_s9   ;;  %s344_s9 = sphi %s363_s9, %s448_s9   ;;  %s340_s8 = sphi %s361_s8, %s447_s8   ;;  %s336_s7 = sphi %s359_s7, %s446_s7   ;;  %s332_s6 = sphi %s357_s6, %s445_s6  }
   0x5   : > { %s382_s12 = sadd.s32 1, %s344_s9   ;;  %s43_s13 = sadd.s32 1, %s340_s8 }
   0x6   : > { %s40_s14 = ssub.s32 %s344_s9, %s382_s12  ;;  %p53_p0 = scmp.ne.s32.totalorder %s340_s8, %s336_s7 }
   0x7   : > { %p41_p1 = scmp.eq.s32.totalorder %s40_s14, 0  ;;  %p54_p2 = scmp.eq.s32.totalorder %s378_s10, 1 }
   0x8   : > { %p59_p3 = scmp.ne.s32.totalorder %s336_s7, %s332_s6  ;;  %p60_p4 = scmp.eq.s32.totalorder %s188_s11, 1 }
   0x9   : > { %s393_s15 = scalar_select %p41_p1, %s340_s8, %s43_s13  }
   0xa   : > { %p395_p5 = por %p54_p2, %p53_p0  ;;  %p399_p6 = por %p60_p4, %p59_p3 }
   0xb   : > { %p189_p7 = scmp.ge.s32.totalorder %s344_s9, 1  ;;  %p67_p8 = scmp.lt.s32.totalorder %s344_s9, 3 }
   0xc   : > { %p212_p9 = scmp.eq.s32.totalorder %s378_s10, 0  ;;  %s79_s20 = sshll.u32 %s441_s0, 4  ;;  %s80_s20 = int_to_ptr.hbm [resolvable:$true] %s79_s20 }
   0xd   : > { %p68_p10 = pnand %p189_p7, %p67_p8  ;;  %s346_s21 = smov [#allocation2]  }
   0xe   : > { %s81_s22 = sshll.u32 %s346_s21, 4  ;;  %s82_s22 = int_to_ptr.vmem [resolvable:$true] %s81_s22 }
   0xf   : > { %p204_p11 = pneg %p68_p10  ;;  %94 = sbr.rel (%p68_p10) target bundleno = 37 (0x25), region = 24 }
  0x11   : > { %p205_p12 = pnand %p212_p9, %p204_p11 }
  0x13   : > { %207 = dma.hbm_to_vmem [thread:$0]  (!%p205_p12), %s80_s20, 128, %s82_s22, [#allocation3]  }
  0x14   : > { %323 = dma.done.wait (%p212_p9), [#allocation3], 128  }
  0x15   : > { %325 = vsyncadd (%p212_p9), [#allocation3], 4294967168  ;;  %s107_s23 = sand.u32 1, %s336_s7   ;;  %s195_s24 = sshll.u32 %s378_s10, 3  ;;  %v110_v0 = vld [vmem:[#allocation2] sm:$0xff] }
  0x16   : > { %s193_s25 = sshll.u32 %s107_s23, 3  ;;  %s124_s28 = scalar_lea.hbm %s442_s1, %s195_s24  ;;  %v111_v1 = vmul.f32 2.0, %v110_v0 }
  0x17   : > { %s109_s29 = scalar_lea.vmem [#allocation5], %s193_s25  ;;  %s128_s2 = sshll.u32 %s124_s28, 4  ;;  %s129_s2 = int_to_ptr.hbm [resolvable:$true] %s128_s2 }
  0x18   : > { %s126_s30 = sshll.u32 %s109_s29, 4  ;;  %112 = vst [vmem:[%s109_s29] sm:$0xff] %v111_v1  ;;  %s114_s3 = scalar_lea.sflag [#allocation4], %s107_s23  ;;  %s127_s30 = int_to_ptr.vmem [resolvable:$true] %s126_s30 }
  0x19   : > { %s292_s4 = sshra.s32 %s129_s2, 4  ;;  %s298_s13 = scalar_lea.hbm %s442_s1, 16  ;;  %s293_s4 = int_to_ptr.hbm [resolvable:$true] %s292_s4 }
  0x1a   : > { %s294_s5 = scalar_lea.hbm %s293_s4, 8  ;;  %p299_p2 = scmp.lt.s32.totalorder %s293_s4, %s442_s1 }
  0x1b   : > { %p295_p13 = scmp.ne.s32.totalorder %s293_s4, %s294_s5  ;;  %p300_p3 = scmp.lt.s32.totalorder %s298_s13, %s294_s5 }
  0x1d   : > { %p296_p0 = pnand %p295_p13, %p395_p5  ;;  %p301_p4 = por %p300_p3, %p299_p2 }
  0x1f   : > { %p297_p1 = pneg %p296_p0 }
  0x21   : > { %p302_p7 = pnand %p301_p4, %p297_p1 }
  0x23   : > { %305 = shalt.err (!%p302_p7)
}
  0x24   : > { %202 = dma.vmem_to_hbm [thread:$0]  (%p395_p5), %s127_s30, 128, %s129_s2, %s114_s3  }
  0x25 PF: > { %p214_p8 = scmp.ge.s32.totalorder %s344_s9, 2  ;;  %s140_s19 = sand.u32 1, %s332_s6  }
  0x26   : > { %s141_s20 = scalar_lea.sflag [#allocation4], %s140_s19 }
  0x27   : > { %p209_p9 = pnand %p214_p8, %p399_p6 }
  0x29   : > { %p210_p10 = pneg %p209_p9 }
  0x2b   : > { %327 = dma.done.wait (%p210_p10), %s141_s20, 128  }
  0x2c   : > { %329 = vsyncadd (%p210_p10), %s141_s20, 4294967168  ;;  %p12_p11 = scmp.ge.s32.totalorder %s382_s12, 4   ;;  %s445_s6 = smov %s336_s7 }
  0x2d   : > { %s446_s7 = smov %s340_s8  ;;  %s447_s8 = smov %s393_s15 }
  0x2e   : > { %s448_s9 = smov %s382_s12  ;;  %14 = sbr.rel (!%p12_p11) target bundleno = 4 (0x4), region = 61 }
  0x33   :  { %147 = vsyncpa [#allocation3], 1 }
  0x34   :  { %149 = vsyncpa [#allocation3 + $0x1], 1 }
  0x35   :  { %150 = vsyncpa [#allocation4], 1 }
  0x36   :  { %152 = vsyncpa [#allocation4 + $0x1], 1 }

// kernel: tpu_custom_call.1
= control target key start
LH: loop header
LB: loop body
LE: loop exit
PB: predicated region body
PF: predicated region fallthrough
CT: control target
= control target key end

     0   :  { %9 = vsyncpa [#allocation6], 0  ;;  %s3104_s0 = inlined_call_operand.hbm [shape: f32[5,8,128], index: 0, kind: input, shape index: {}]   ;;  %s3105_s1 = inlined_call_operand.hbm [shape: bf16[128,512], index: 1, kind: input, shape index: {}]   ;;  %s3106_s2 = inlined_call_operand.hbm [shape: bf16[128,512], index: 2, kind: input, shape index: {}]   ;;  %s3107_s3 = inlined_call_operand.hbm [shape: f32[1,512], index: 3, kind: input, shape index: {}]   ;;  %s3108_s4 = inlined_call_operand.hbm [shape: f32[5,8,128], index: 4, kind: output, shape index: {}]  }
   0x1   :  { %10 = vsyncpa [#allocation9], 0 }
   0x2   :  { %11 = vsyncpa [#allocation12], 0  ;;  %s30_s17 = sshll.u32 %s3105_s1, 4  ;;  %s31_s17 = int_to_ptr.hbm [resolvable:$true] %s30_s17 }
   0x3   :  { %12 = vsyncpa [#allocation7], 0  ;;  %s2948_s18 = smov [#allocation8]   ;;  %s17_s22 = sshll.u32 %s3104_s0, 4  ;;  %s18_s22 = int_to_ptr.hbm [resolvable:$true] %s17_s22 }
   0x4   :  { %s32_s19 = sshll.u32 %s2948_s18, 4  ;;  %s2949_s23 = smov 256   ;;  %s33_s19 = int_to_ptr.vmem [resolvable:$true] %s32_s19 }
   0x5   :  { %s2950_s24 = smov 16   ;;  %s2951_s25 = smov [#allocation5]  }
   0x6   :  { %38 = dma.hbm_to_vmem [thread:$0]  %s31_s17, 4096, %s33_s19, [#allocation9], %s2949_s23, %s2949_s23, %s2950_s24  }
   0x7   :  { %s19_s26 = sshll.u32 %s2951_s25, 4  ;;  %s2952_s27 = smov 128   ;;  %s20_s26 = int_to_ptr.vmem [resolvable:$true] %s19_s26 }
   0x8   :  { %s2953_s28 = smov 8   ;;  %s43_s30 = sshll.u32 %s3106_s2, 4  ;;  %s44_s30 = int_to_ptr.hbm [resolvable:$true] %s43_s30 }
   0x9   :  { %25 = dma.hbm_to_vmem [thread:$0]  %s18_s22, 640, %s20_s26, [#allocation6], %s2952_s27, %s2952_s27, %s2953_s28  }
   0xa   :  { %s2954_s5 = smov [#allocation10]   ;;  %s57_s8 = sshll.u32 %s3107_s3, 4  ;;  %s58_s8 = int_to_ptr.hbm [resolvable:$true] %s57_s8 }
   0xb   :  { %s45_s0 = sshll.u32 %s2954_s5, 4  ;;  %s2955_s9 = smov [#allocation11]   ;;  %s46_s0 = int_to_ptr.vmem [resolvable:$true] %s45_s0 }
   0xc   :  { %51 = dma.hbm_to_vmem [thread:$0]  %s44_s30, 4096, %s46_s0, [#allocation9], %s2949_s23, %s2949_s23, %s2950_s24  }
   0xd   :  { %s59_s10 = sshll.u32 %s2955_s9, 4  ;;  %s60_s10 = int_to_ptr.vmem [resolvable:$true] %s59_s10 }
   0xe   :  { %62 = dma.hbm_to_vmem [thread:$0]  %s58_s8, 64, %s60_s10, [#allocation12]  }
   0xf   :  { %2940 = dma.done.wait [#allocation6], 640  }
  0x10   :  { %2941 = vsyncadd [#allocation6], 4294966656 }
  0x11   :  { %2942 = dma.done.wait [#allocation9], 8192  }
  0x12   :  { %2943 = vsyncadd [#allocation9], 4294959104 }
  0x13   :  { %2944 = dma.done.wait [#allocation12], 64  }
  0x14   :  { %2945 = vsyncadd [#allocation12], 4294967232  ;;  %v1914_v0 = vld [vmem:[#allocation8 + $0xe0] sm:$0xf]  ;;  %v2598_v1 = vld [vmem:[#allocation8 + $0xec] sm:$0xf0] }
  0x15   :  { %v2596_v2 = vld [vmem:[#allocation8 + $0xe4] sm:$0xf]  ;;  %v1915_v3 = vor.u32 %v2598_v1, %v1914_v0  ;;  %v1916_v4 = vld [vmem:[#allocation8 + $0xf0] sm:$0xf0]  ;;  %v1922_v5 = vld [vmem:[#allocation8 + $0xe8] sm:$0xf] }
  0x16   :  { %v2599_v6 = vld [vmem:[#allocation8 + $0xf4] sm:$0xf0]  ;;  %v1919_v7 = vor.u32 %v2596_v2, %v1916_v4  ;;  %v2597_v9 = vld [vmem:[#allocation8 + $0xec] sm:$0xf]  ;;  %v1924_v10 = vld [vmem:[#allocation8 + $0xf8] sm:$0xf0] }
  0x17   :  { %v1923_v8 = vor.u32 %v2599_v6, %v1922_v5  ;;  %v1898_v11 = vld [vmem:[#allocation8 + $0xc0] sm:$0xf]  ;;  %295 = vmatpush.bf16.msra.mxu0 %v1915_v3  ;;  %v1927_v12 = vor.u32 %v2597_v9, %v1924_v10  ;;  %v2594_v13 = vld [vmem:[#allocation8 + $0xcc] sm:$0xf0]  ;;  %v2592_v14 = vld [vmem:[#allocation8 + $0xc4] sm:$0xf] }
  0x18   :  { %v1900_v15 = vld [vmem:[#allocation8 + $0xd0] sm:$0xf0]  ;;  %318 = vmatpush.bf16.msra.mxu1 %v1919_v7  ;;  %v1899_v16 = vor.u32 %v2594_v13, %v1898_v11  ;;  %v1906_v18 = vld [vmem:[#allocation8 + $0xc8] sm:$0xf]  ;;  %v2595_v19 = vld [vmem:[#allocation8 + $0xd4] sm:$0xf0] }
  0x19   :  { %341 = vmatpush.bf16.msra.mxu2 %v1923_v8  ;;  %v1903_v17 = vor.u32 %v2592_v14, %v1900_v15  ;;  %v2593_v20 = vld [vmem:[#allocation8 + $0xcc] sm:$0xf]  ;;  %364 = vmatpush.bf16.msra.mxu3 %v1927_v12  ;;  %v1907_v21 = vor.u32 %v2595_v19, %v1906_v18  ;;  %v1908_v22 = vld [vmem:[#allocation8 + $0xd8] sm:$0xf0]  ;;  %v1882_v23 = vld [vmem:[#allocation8 + $0xa0] sm:$0xf] }
  0x1a   :  { %v2590_v24 = vld [vmem:[#allocation8 + $0xac] sm:$0xf0]  ;;  %v1911_v25 = vor.u32 %v2593_v20, %v1908_v22  ;;  %v2588_v26 = vld [vmem:[#allocation8 + $0xa4] sm:$0xf]  ;;  %v1884_v27 = vld [vmem:[#allocation8 + $0xb0] sm:$0xf0] }
  0x1b   :  { %v1890_v28 = vld [vmem:[#allocation8 + $0xa8] sm:$0xf]  ;;  %296 = vmatpush.bf16.msra.mxu0 %v1899_v16  ;;  %v1883_v29 = vor.u32 %v2590_v24, %v1882_v23  ;;  %v2591_v30 = vld [vmem:[#allocation8 + $0xb4] sm:$0xf0]  ;;  %v2589_v31 = vld [vmem:[#allocation8 + $0xac] sm:$0xf]  ;;  %v1887_v33 = vor.u32 %v2588_v26, %v1884_v27 }
  0x1c   :  { %v1892_v32 = vld [vmem:[#allocation8 + $0xb8] sm:$0xf0]  ;;  %319 = vmatpush.bf16.msra.mxu1 %v1903_v17  ;;  %v1891_v34 = vor.u32 %v2591_v30, %v1890_v28  ;;  %v1866_v35 = vld [vmem:[#allocation8 + $0x80] sm:$0xf]  ;;  %v2586_v36 = vld [vmem:[#allocation8 + $0x8c] sm:$0xf0] }
  0x1d   :  { %342 = vmatpush.bf16.msra.mxu2 %v1907_v21  ;;  %v2584_v37 = vld [vmem:[#allocation8 + $0x84] sm:$0xf]  ;;  %365 = vmatpush.bf16.msra.mxu3 %v1911_v25  ;;  %v1895_v38 = vor.u32 %v2589_v31, %v1892_v32  ;;  %v1868_v39 = vld [vmem:[#allocation8 + $0x90] sm:$0xf0]  ;;  %v1874_v40 = vld [vmem:[#allocation8 + $0x88] sm:$0xf]  ;;  %v1867_v44 = vor.u32 %v2586_v36, %v1866_v35 }
  0x1e   :  { %v2587_v41 = vld [vmem:[#allocation8 + $0x94] sm:$0xf0]  ;;  %v2585_v42 = vld [vmem:[#allocation8 + $0x8c] sm:$0xf]  ;;  %v1876_v43 = vld [vmem:[#allocation8 + $0x98] sm:$0xf0]  ;;  %v1871_v45 = vor.u32 %v2584_v37, %v1868_v39 }
  0x1f   :  { %297 = vmatpush.bf16.msra.mxu0 %v1883_v29  ;;  %v1875_v46 = vor.u32 %v2587_v41, %v1874_v40  ;;  %v1850_v47 = vld [vmem:[#allocation8 + $0x60] sm:$0xf]  ;;  %v2582_v48 = vld [vmem:[#allocation8 + $0x6c] sm:$0xf0]  ;;  %v2580_v49 = vld [vmem:[#allocation8 + $0x64] sm:$0xf]  ;;  %v1879_v50 = vor.u32 %v2585_v42, %v1876_v43 }
  0x20   :  { %320 = vmatpush.bf16.msra.mxu1 %v1887_v33  ;;  %v1852_v51 = vld [vmem:[#allocation8 + $0x70] sm:$0xf0]  ;;  %v1858_v52 = vld [vmem:[#allocation8 + $0x68] sm:$0xf]  ;;  %v2583_v53 = vld [vmem:[#allocation8 + $0x74] sm:$0xf0]  ;;  %v1851_v56 = vor.u32 %v2582_v48, %v1850_v47 }
  0x21   :  { %343 = vmatpush.bf16.msra.mxu2 %v1891_v34  ;;  %366 = vmatpush.bf16.msra.mxu3 %v1895_v38  ;;  %v2581_v54 = vld [vmem:[#allocation8 + $0x6c] sm:$0xf]  ;;  %v1860_v55 = vld [vmem:[#allocation8 + $0x78] sm:$0xf0]  ;;  %v1855_v57 = vor.u32 %v2580_v49, %v1852_v51  ;;  %v1859_v58 = vor.u32 %v2583_v53, %v1858_v52  ;;  %v1834_v59 = vld [vmem:[#allocation8 + $0x40] sm:$0xf] }
  0x22   :  { %v2578_v60 = vld [vmem:[#allocation8 + $0x4c] sm:$0xf0]  ;;  %v2576_v61 = vld [vmem:[#allocation8 + $0x44] sm:$0xf]  ;;  %v1863_v62 = vor.u32 %v2581_v54, %v1860_v55  ;;  %v1836_v63 = vld [vmem:[#allocation8 + $0x50] sm:$0xf0] }
  0x23   :  { %298 = vmatpush.bf16.msra.mxu0 %v1867_v44  ;;  %v1842_v0 = vld [vmem:[#allocation8 + $0x48] sm:$0xf]  ;;  %v2579_v1 = vld [vmem:[#allocation8 + $0x54] sm:$0xf0]  ;;  %v2577_v2 = vld [vmem:[#allocation8 + $0x4c] sm:$0xf]  ;;  %v1835_v4 = vor.u32 %v2578_v60, %v1834_v59  ;;  %v1839_v5 = vor.u32 %v2576_v61, %v1836_v63 }
  0x24   :  { %321 = vmatpush.bf16.msra.mxu1 %v1871_v45  ;;  %v1844_v3 = vld [vmem:[#allocation8 + $0x58] sm:$0xf0]  ;;  %v1843_v6 = vor.u32 %v2579_v1, %v1842_v0  ;;  %v1818_v7 = vld [vmem:[#allocation8 + $0x20] sm:$0xf]  ;;  %v2574_v8 = vld [vmem:[#allocation8 + $0x2c] sm:$0xf0] }
  0x25   :  { %344 = vmatpush.bf16.msra.mxu2 %v1875_v46  ;;  %367 = vmatpush.bf16.msra.mxu3 %v1879_v50  ;;  %v2572_v9 = vld [vmem:[#allocation8 + $0x24] sm:$0xf]  ;;  %v1847_v10 = vor.u32 %v2577_v2, %v1844_v3  ;;  %v1820_v11 = vld [vmem:[#allocation8 + $0x30] sm:$0xf0]  ;;  %v1826_v12 = vld [vmem:[#allocation8 + $0x28] sm:$0xf]  ;;  %v1819_v16 = vor.u32 %v2574_v8, %v1818_v7 }
  0x26   :  { %v2575_v13 = vld [vmem:[#allocation8 + $0x34] sm:$0xf0]  ;;  %v2573_v14 = vld [vmem:[#allocation8 + $0x2c] sm:$0xf]  ;;  %v1828_v15 = vld [vmem:[#allocation8 + $0x38] sm:$0xf0]  ;;  %v1823_v19 = vor.u32 %v2572_v9, %v1820_v11 }
  0x27   :  { %299 = vmatpush.bf16.msra.mxu0 %v1851_v56  ;;  %v1802_v17 = vld [vmem:[#allocation8] sm:$0xf]  ;;  %v2570_v18 = vld [vmem:[#allocation8 + $0xc] sm:$0xf0]  ;;  %v1827_v20 = vor.u32 %v2575_v13, %v1826_v12  ;;  %v2568_v21 = vld [vmem:[#allocation8 + $0x4] sm:$0xf]  ;;  %v1831_v24 = vor.u32 %v2573_v14, %v1828_v15 }
  0x28   :  { %322 = vmatpush.bf16.msra.mxu1 %v1855_v57  ;;  %v1804_v22 = vld [vmem:[#allocation8 + $0x10] sm:$0xf0]  ;;  %v1810_v23 = vld [vmem:[#allocation8 + $0x8] sm:$0xf]  ;;  %v2571_v25 = vld [vmem:[#allocation8 + $0x14] sm:$0xf0]  ;;  %v1803_v31 = vor.u32 %v2570_v18, %v1802_v17 }
  0x29   :  { %345 = vmatpush.bf16.msra.mxu2 %v1859_v58  ;;  %368 = vmatpush.bf16.msra.mxu3 %v1863_v62  ;;  %v2569_v26 = vld [vmem:[#allocation8 + $0xc] sm:$0xf]  ;;  %v1812_v27 = vld [vmem:[#allocation8 + $0x18] sm:$0xf0]  ;;  %v2042_v29 = vld [vmem:[#allocation10 + $0xe0] sm:$0xf]  ;;  %v1807_v35 = vor.u32 %v2568_v21, %v1804_v22  ;;  %v1811_v36 = vor.u32 %v2571_v25, %v1810_v23 }
  0x2a   :  { %v85_v28 = vld [vmem:[#allocation5] sm:$0xff]  ;;  %v2630_v30 = vld [vmem:[#allocation10 + $0xec] sm:$0xf0]  ;;  %v86_v32 = vld [vmem:[#allocation5 + $0x8] sm:$0xff]  ;;  %v1815_v37 = vor.u32 %v2569_v26, %v1812_v27  ;;  %s2957_s2 = smov [#allocation13]   ;;  %s1785_s13 = sshll.u32 %s3108_s4, 4  ;;  %s1786_s13 = int_to_ptr.hbm [resolvable:$true] %s1785_s13 }
  0x2b   :  { %300 = vmatpush.bf16.msra.mxu0 %v1835_v4  ;;  %v2628_v33 = vld [vmem:[#allocation10 + $0xe4] sm:$0xf]  ;;  %v2044_v34 = vld [vmem:[#allocation10 + $0xf0] sm:$0xf0]  ;;  %v2043_v38 = vor.u32 %v2630_v30, %v2042_v29  ;;  %v2629_v39 = vld [vmem:[#allocation10 + $0xec] sm:$0xf]  ;;  %v90_v42 = vpack.c.bf16 %v86_v32, %v85_v28 }
  0x2c   :  { %323 = vmatpush.bf16.msra.mxu1 %v1839_v5  ;;  %v2050_v40 = vld [vmem:[#allocation10 + $0xe8] sm:$0xf]  ;;  %v2631_v41 = vld [vmem:[#allocation10 + $0xf4] sm:$0xf0]  ;;  %v2047_v43 = vor.u32 %v2628_v33, %v2044_v34  ;;  %v2052_v44 = vld [vmem:[#allocation10 + $0xf8] sm:$0xf0] }
  0x2d   :  { %346 = vmatpush.bf16.msra.mxu2 %v1843_v6  ;;  %369 = vmatpush.bf16.msra.mxu3 %v1847_v10  ;;  %v2026_v45 = vld [vmem:[#allocation10 + $0xc0] sm:$0xf]  ;;  %v2626_v46 = vld [vmem:[#allocation10 + $0xcc] sm:$0xf0]  ;;  %v2624_v47 = vld [vmem:[#allocation10 + $0xc4] sm:$0xf]  ;;  %v2051_v49 = vor.u32 %v2631_v41, %v2050_v40  ;;  %v2055_v50 = vor.u32 %v2629_v39, %v2052_v44 }
  0x2e   :  { %v2028_v48 = vld [vmem:[#allocation10 + $0xd0] sm:$0xf0]  ;;  %v2027_v51 = vor.u32 %v2626_v46, %v2026_v45  ;;  %v2625_v52 = vld [vmem:[#allocation10 + $0xcc] sm:$0xf]  ;;  %v2034_v53 = vld [vmem:[#allocation10 + $0xc8] sm:$0xf] }
  0x2f   :  { %301 = vmatpush.bf16.msra.mxu0 %v1819_v16  ;;  %v2627_v54 = vld [vmem:[#allocation10 + $0xd4] sm:$0xf0]  ;;  %v2031_v55 = vor.u32 %v2624_v47, %v2028_v48  ;;  %v2036_v56 = vld [vmem:[#allocation10 + $0xd8] sm:$0xf0]  ;;  %v2010_v57 = vld [vmem:[#allocation10 + $0xa0] sm:$0xf] }
  0x30   :  { %324 = vmatpush.bf16.msra.mxu1 %v1823_v19  ;;  %v2622_v58 = vld [vmem:[#allocation10 + $0xac] sm:$0xf0]  ;;  %v2620_v59 = vld [vmem:[#allocation10 + $0xa4] sm:$0xf]  ;;  %v2012_v60 = vld [vmem:[#allocation10 + $0xb0] sm:$0xf0]  ;;  %v2035_v61 = vor.u32 %v2627_v54, %v2034_v53  ;;  %v2039_v62 = vor.u32 %v2625_v52, %v2036_v56 }
  0x31   :  { %347 = vmatpush.bf16.msra.mxu2 %v1827_v20  ;;  %370 = vmatpush.bf16.msra.mxu3 %v1831_v24  ;;  %v2011_v63 = vor.u32 %v2622_v58, %v2010_v57  ;;  %v2621_v0 = vld [vmem:[#allocation10 + $0xac] sm:$0xf]  ;;  %v2018_v1 = vld [vmem:[#allocation10 + $0xa8] sm:$0xf]  ;;  %v2623_v2 = vld [vmem:[#allocation10 + $0xb4] sm:$0xf0]  ;;  %v2015_v3 = vor.u32 %v2620_v59, %v2012_v60 }
  0x32   :  { %v2020_v4 = vld [vmem:[#allocation10 + $0xb8] sm:$0xf0]  ;;  %v1994_v5 = vld [vmem:[#allocation10 + $0x80] sm:$0xf]  ;;  %v2618_v6 = vld [vmem:[#allocation10 + $0x8c] sm:$0xf0]  ;;  %v2019_v9 = vor.u32 %v2623_v2, %v2018_v1 }
  0x33   :  { %302 = vmatpush.bf16.msra.mxu0 %v1803_v31  ;;  %v2616_v7 = vld [vmem:[#allocation10 + $0x84] sm:$0xf]  ;;  %v1996_v8 = vld [vmem:[#allocation10 + $0x90] sm:$0xf0]  ;;  %v2023_v10 = vor.u32 %v2621_v0, %v2020_v4  ;;  %v87_v11 = vld [vmem:[#allocation5 + $0x10] sm:$0xff]  ;;  %v1995_v12 = vor.u32 %v2618_v6, %v1994_v5  ;;  %s1783_s3 = sshll.u32 %s2957_s2, 4  ;;  %s1784_s3 = int_to_ptr.vmem [resolvable:$true] %s1783_s3 }
  0x34   :  { %325 = vmatpush.bf16.msra.mxu1 %v1807_v35  ;;  %v2617_v13 = vld [vmem:[#allocation10 + $0x8c] sm:$0xf]  ;;  %v2002_v14 = vld [vmem:[#allocation10 + $0x88] sm:$0xf]  ;;  %v2619_v15 = vld [vmem:[#allocation10 + $0x94] sm:$0xf0]  ;;  %v1999_v16 = vor.u32 %v2616_v7, %v1996_v8 }
  0x35   :  { %348 = vmatpush.bf16.msra.mxu2 %v1811_v36  ;;  %371 = vmatpush.bf16.msra.mxu3 %v1815_v37  ;;  %v2004_v17 = vld [vmem:[#allocation10 + $0x98] sm:$0xf0]  ;;  %v1978_v18 = vld [vmem:[#allocation10 + $0x60] sm:$0xf]  ;;  %v2614_v19 = vld [vmem:[#allocation10 + $0x6c] sm:$0xf0]  ;;  %v2003_v23 = vor.u32 %v2619_v15, %v2002_v14 }
  0x36   :  { %303 = vmatmul.bf16.vlgmr.msra.gmra.mxu0 %v90_v42  ;;  %v88_v20 = vld [vmem:[#allocation5 + $0x18] sm:$0xff]  ;;  %v2612_v21 = vld [vmem:[#allocation10 + $0x64] sm:$0xf]  ;;  %v2007_v24 = vor.u32 %v2617_v13, %v2004_v17  ;;  %v1979_v25 = vor.u32 %v2614_v19, %v1978_v18  ;;  %v2613_v26 = vld [vmem:[#allocation10 + $0x6c] sm:$0xf]  ;;  %v2956_v8 = vmov 0.0|0.0  }
  0x37   :  { %606 = vmatpush.bf16.msrb.mxu0 %v2043_v38  ;;  %326 = vmatmul.bf16.vlgmr.msra.gmra.mxu1 %v90_v42  ;;  %v1980_v22 = vld [vmem:[#allocation10 + $0x70] sm:$0xf0]  ;;  %v1986_v27 = vld [vmem:[#allocation10 + $0x68] sm:$0xf]  ;;  %v2615_v28 = vld [vmem:[#allocation10 + $0x74] sm:$0xf0]  ;;  %v91_v29 = vpack.c.bf16 %v88_v20, %v87_v11 }
  0x38   :  { %619 = vmatpush.bf16.msrb.mxu1 %v2047_v43  ;;  %349 = vmatmul.bf16.vlgmr.msra.gmra.mxu2 %v90_v42  ;;  %v1983_v30 = vor.u32 %v2612_v21, %v1980_v22  ;;  %v1988_v31 = vld [vmem:[#allocation10 + $0x78] sm:$0xf0]  ;;  %v1962_v32 = vld [vmem:[#allocation10 + $0x40] sm:$0xf]  ;;  %v2610_v33 = vld [vmem:[#allocation10 + $0x4c] sm:$0xf0]  ;;  %v1987_v36 = vor.u32 %v2615_v28, %v1986_v27 }
  0x39   :  { %372 = vmatmul.bf16.vlgmr.msra.gmra.mxu3 %v90_v42  ;;  %632 = vmatpush.bf16.msrb.mxu2 %v2051_v49  ;;  %v2608_v34 = vld [vmem:[#allocation10 + $0x44] sm:$0xf]  ;;  %v1964_v35 = vld [vmem:[#allocation10 + $0x50] sm:$0xf0]  ;;  %v1991_v37 = vor.u32 %v2613_v26, %v1988_v31  ;;  %v1963_v38 = vor.u32 %v2610_v33, %v1962_v32  ;;  %v2609_v39 = vld [vmem:[#allocation10 + $0x4c] sm:$0xf] }
  0x3a   :  { %645 = vmatpush.bf16.msrb.mxu3 %v2055_v50  ;;  %v1970_v40 = vld [vmem:[#allocation10 + $0x48] sm:$0xf]  ;;  %v2611_v41 = vld [vmem:[#allocation10 + $0x54] sm:$0xf0]  ;;  %v1967_v42 = vor.u32 %v2608_v34, %v1964_v35  ;;  %v1972_v43 = vld [vmem:[#allocation10 + $0x58] sm:$0xf0] }
  0x3b   :  { %607 = vmatpush.bf16.msrb.mxu0 %v2027_v51  ;;  %v1946_v44 = vld [vmem:[#allocation10 + $0x20] sm:$0xf]  ;;  %v2606_v45 = vld [vmem:[#allocation10 + $0x2c] sm:$0xf0]  ;;  %v2604_v46 = vld [vmem:[#allocation10 + $0x24] sm:$0xf]  ;;  %v1971_v48 = vor.u32 %v2611_v41, %v1970_v40  ;;  %v1975_v49 = vor.u32 %v2609_v39, %v1972_v43 }
  0x3c   :  { %620 = vmatpush.bf16.msrb.mxu1 %v2031_v55  ;;  %v1948_v47 = vld [vmem:[#allocation10 + $0x30] sm:$0xf0]  ;;  %v1947_v50 = vor.u32 %v2606_v45, %v1946_v44  ;;  %v2605_v51 = vld [vmem:[#allocation10 + $0x2c] sm:$0xf]  ;;  %v1954_v52 = vld [vmem:[#allocation10 + $0x28] sm:$0xf] }
  0x3d   :  { %633 = vmatpush.bf16.msrb.mxu2 %v2035_v61  ;;  %v2607_v53 = vld [vmem:[#allocation10 + $0x34] sm:$0xf0]  ;;  %v1951_v54 = vor.u32 %v2604_v46, %v1948_v47  ;;  %v1956_v55 = vld [vmem:[#allocation10 + $0x38] sm:$0xf0]  ;;  %v1930_v56 = vld [vmem:[#allocation10] sm:$0xf] }
  0x3e   :  { %646 = vmatpush.bf16.msrb.mxu3 %v2039_v62  ;;  %v2602_v57 = vld [vmem:[#allocation10 + $0xc] sm:$0xf0]  ;;  %v2600_v58 = vld [vmem:[#allocation10 + $0x4] sm:$0xf]  ;;  %v1932_v59 = vld [vmem:[#allocation10 + $0x10] sm:$0xf0]  ;;  %v1955_v60 = vor.u32 %v2607_v53, %v1954_v52  ;;  %v1959_v61 = vor.u32 %v2605_v51, %v1956_v55 }
  0x3f   :  { %608 = vmatpush.bf16.msrb.mxu0 %v2011_v63  ;;  %v1931_v62 = vor.u32 %v2602_v57, %v1930_v56  ;;  %v1938_v63 = vld [vmem:[#allocation10 + $0x8] sm:$0xf]  ;;  %v2603_v0 = vld [vmem:[#allocation10 + $0x14] sm:$0xf0]  ;;  %v1935_v1 = vor.u32 %v2600_v58, %v1932_v59  ;;  %v2601_v2 = vld [vmem:[#allocation10 + $0xc] sm:$0xf] }
  0x40   :  { %621 = vmatpush.bf16.msrb.mxu1 %v2015_v3  ;;  %v1940_v3 = vld [vmem:[#allocation10 + $0x18] sm:$0xf0]  ;;  %v1939_v5 = vor.u32 %v2603_v0, %v1938_v63  ;;  %v125_v11 = vld [vmem:[#allocation11] sm:$0xf]  ;;  %v2178_v31 = vld [vmem:[#allocation10 + $0xe8] sm:$0xf] }
  0x41   :  { %634 = vmatpush.bf16.msrb.mxu2 %v2019_v9  ;;  %v89_v4 = vld [vmem:[#allocation5 + $0x20] sm:$0xff]  ;;  %v1943_v6 = vor.u32 %v2601_v2, %v1940_v3  ;;  %v3006_v14 = vperm.slane %v125_v11, 1  ;;  %v3016_v20 = vperm.slane %v125_v11, 2  ;;  %v3018_v21 = vperm.slane %v125_v11, 3  ;;  %v2658_v43 = vld [vmem:[#allocation10 + $0xcc] sm:$0xf0] }
  0x42   :  { %647 = vmatpush.bf16.msrb.mxu3 %v2023_v10  ;;  %v92_v7 = vpack.c.bf16 %v89_v4, %v89_v4  ;;  %v2663_v32 = vld [vmem:[#allocation10 + $0xf4] sm:$0xf0]  ;;  %v2180_v39 = vld [vmem:[#allocation10 + $0xf8] sm:$0xf0]  ;;  %v2656_v44 = vld [vmem:[#allocation10 + $0xc4] sm:$0xf] }
  0x43   :  { %609 = vmatpush.bf16.msrb.mxu0 %v1995_v12  ;;  %v3002_v12 = vperm.slane %v125_v11, 0  ;;  %v2156_v46 = vld [vmem:[#allocation10 + $0xd0] sm:$0xf0]  ;;  %v2162_v47 = vld [vmem:[#allocation10 + $0xc8] sm:$0xf] }
  0x44   :  { %622 = vmatpush.bf16.msrb.mxu1 %v1999_v16  ;;  %v2657_v51 = vld [vmem:[#allocation10 + $0xcc] sm:$0xf]  ;;  %v2164_v52 = vld [vmem:[#allocation10 + $0xd8] sm:$0xf0]  ;;  %v2138_v55 = vld [vmem:[#allocation10 + $0xa0] sm:$0xf] }
  0x45   :  { %635 = vmatpush.bf16.msrb.mxu2 %v2003_v23  ;;  %v2170_v23 = vld [vmem:[#allocation10 + $0xe0] sm:$0xf]  ;;  %v2167_v53 = vor.u32 %v2657_v51, %v2164_v52  ;;  %v2654_v56 = vld [vmem:[#allocation10 + $0xac] sm:$0xf0]  ;;  %v2652_v57 = vld [vmem:[#allocation10 + $0xa4] sm:$0xf] }
  0x46   :  { %648 = vmatpush.bf16.msrb.mxu3 %v2007_v24  ;;  %308 = vmatmul.bf16.gmra.mxu0 %v91_v29  ;;  %v2662_v24 = vld [vmem:[#allocation10 + $0xec] sm:$0xf0]  ;;  %v2146_v63 = vld [vmem:[#allocation10 + $0xa8] sm:$0xf]  ;;  %v2655_v0 = vld [vmem:[#allocation10 + $0xb4] sm:$0xf0] }
  0x47   :  { %610 = vmatpush.bf16.msrb.mxu0 %v1979_v25  ;;  %331 = vmatmul.bf16.gmra.mxu1 %v91_v29  ;;  %v2660_v25 = vld [vmem:[#allocation10 + $0xe4] sm:$0xf]  ;;  %v2645_v52 = vld [vmem:[#allocation10 + $0x6c] sm:$0xf] }
  0x48   :  { %623 = vmatpush.bf16.msrb.mxu1 %v1983_v30  ;;  %354 = vmatmul.bf16.gmra.mxu2 %v91_v29  ;;  %v2172_v30 = vld [vmem:[#allocation10 + $0xf0] sm:$0xf0] }
  0x49   :  { %377 = vmatmul.bf16.gmra.mxu3 %v91_v29  ;;  %636 = vmatpush.bf16.msrb.mxu2 %v1987_v36  ;;  %v2171_v29 = vor.u32 %v2662_v24, %v2170_v23  ;;  %v2175_v36 = vor.u32 %v2660_v25, %v2172_v30  ;;  %v2124_v24 = vld [vmem:[#allocation10 + $0x90] sm:$0xf0]  ;;  %v2130_v25 = vld [vmem:[#allocation10 + $0x88] sm:$0xf]  ;;  %v2649_v30 = vld [vmem:[#allocation10 + $0x8c] sm:$0xf] }
  0x4a   :  { %649 = vmatpush.bf16.msrb.mxu3 %v1991_v37  ;;  %v2179_v37 = vor.u32 %v2663_v32, %v2178_v31  ;;  %v2132_v31 = vld [vmem:[#allocation10 + $0x98] sm:$0xf0] }
  0x4b   :  { %611 = vmatpush.bf16.msrb.mxu0 %v1963_v38  ;;  %v2661_v38 = vld [vmem:[#allocation10 + $0xec] sm:$0xf]  ;;  %v2135_v32 = vor.u32 %v2649_v30, %v2132_v31 }
  0x4c   :  { %624 = vmatpush.bf16.msrb.mxu1 %v1967_v42  ;;  %v2183_v41 = vor.u32 %v2661_v38, %v2180_v39  ;;  %v2154_v42 = vld [vmem:[#allocation10 + $0xc0] sm:$0xf]  ;;  %v2644_v38 = vld [vmem:[#allocation10 + $0x64] sm:$0xf] }
  0x4d   :  { %637 = vmatpush.bf16.msrb.mxu2 %v1971_v48  ;;  %v2155_v45 = vor.u32 %v2658_v43, %v2154_v42  ;;  %v2659_v48 = vld [vmem:[#allocation10 + $0xd4] sm:$0xf0] }
  0x4e   :  { %650 = vmatpush.bf16.msrb.mxu3 %v1975_v49  ;;  %v2159_v49 = vor.u32 %v2656_v44, %v2156_v46  ;;  %v2108_v44 = vld [vmem:[#allocation10 + $0x70] sm:$0xf0]  ;;  %v2647_v46 = vld [vmem:[#allocation10 + $0x74] sm:$0xf0] }
  0x4f   :  { %612 = vmatpush.bf16.msrb.mxu0 %v1947_v50  ;;  %v2163_v50 = vor.u32 %v2659_v48, %v2162_v47 }
  0x50   :  { %625 = vmatpush.bf16.msrb.mxu1 %v1951_v54 }
  0x51   :  { %638 = vmatpush.bf16.msrb.mxu2 %v1955_v60 }
  0x52   :  { %651 = vmatpush.bf16.msrb.mxu3 %v1959_v61  ;;  %v2139_v61 = vor.u32 %v2654_v56, %v2138_v55  ;;  %v2090_v56 = vld [vmem:[#allocation10 + $0x40] sm:$0xf] }
  0x53   :  { %613 = vmatpush.bf16.msrb.mxu0 %v1931_v62  ;;  %v2140_v62 = vld [vmem:[#allocation10 + $0xb0] sm:$0xf0] }
  0x54   :  { %626 = vmatpush.bf16.msrb.mxu1 %v1935_v1  ;;  %v2143_v4 = vor.u32 %v2652_v57, %v2140_v62  ;;  %v2642_v57 = vld [vmem:[#allocation10 + $0x4c] sm:$0xf0]  ;;  %v2098_v62 = vld [vmem:[#allocation10 + $0x48] sm:$0xf] }
  0x55   :  { %639 = vmatpush.bf16.msrb.mxu2 %v1939_v5  ;;  %v2147_v5 = vor.u32 %v2655_v0, %v2146_v63  ;;  %v2643_v63 = vld [vmem:[#allocation10 + $0x54] sm:$0xf0] }
  0x56   :  { %652 = vmatpush.bf16.msrb.mxu3 %v1943_v6  ;;  %313 = vmatmul.bf16.gmra.mxu0 %v92_v7  ;;  %v2653_v6 = vld [vmem:[#allocation10 + $0xac] sm:$0xf] }
  0x57   :  { %336 = vmatmul.bf16.gmra.mxu1 %v92_v7  ;;  %879 = vmatpush.bf16.msra.mxu0 %v2171_v29 }
  0x58   :  { %359 = vmatmul.bf16.gmra.mxu2 %v92_v7  ;;  %892 = vmatpush.bf16.msra.mxu1 %v2175_v36  ;;  %v2106_v36 = vld [vmem:[#allocation10 + $0x60] sm:$0xf] }
  0x59   :  { %382 = vmatmul.bf16.gmra.mxu3 %v92_v7  ;;  %905 = vmatpush.bf16.msra.mxu2 %v2179_v37  ;;  %v2148_v7 = vld [vmem:[#allocation10 + $0xb8] sm:$0xf0]  ;;  %v2646_v37 = vld [vmem:[#allocation10 + $0x6c] sm:$0xf0] }
  0x5a   :  { %918 = vmatpush.bf16.msra.mxu3 %v2183_v41  ;;  %v2151_v11 = vor.u32 %v2653_v6, %v2148_v7  ;;  %v2107_v43 = vor.u32 %v2646_v37, %v2106_v36  ;;  %v2074_v7 = vld [vmem:[#allocation10 + $0x20] sm:$0xf] }
  0x5b   :  { %880 = vmatpush.bf16.msra.mxu0 %v2155_v45  ;;  %v2114_v45 = vld [vmem:[#allocation10 + $0x68] sm:$0xf]  ;;  %v2058_v36 = vld [vmem:[#allocation10] sm:$0xf] }
  0x5c   :  { %893 = vmatpush.bf16.msra.mxu1 %v2159_v49  ;;  %v2115_v51 = vor.u32 %v2647_v46, %v2114_v45  ;;  %v2066_v46 = vld [vmem:[#allocation10 + $0x8] sm:$0xf] }
  0x5d   :  { %906 = vmatpush.bf16.msra.mxu2 %v2163_v50  ;;  %v2111_v50 = vor.u32 %v2644_v38, %v2108_v44  ;;  %v2060_v44 = vld [vmem:[#allocation10 + $0x10] sm:$0xf0] }
  0x5e   :  { %919 = vmatpush.bf16.msra.mxu3 %v2167_v53  ;;  %v2116_v53 = vld [vmem:[#allocation10 + $0x78] sm:$0xf0] }
  0x5f   :  { %881 = vmatpush.bf16.msra.mxu0 %v2139_v61  ;;  %v2119_v55 = vor.u32 %v2645_v52, %v2116_v53  ;;  %v2092_v61 = vld [vmem:[#allocation10 + $0x50] sm:$0xf0]  ;;  %v2068_v53 = vld [vmem:[#allocation10 + $0x18] sm:$0xf0] }
  0x60   :  { %894 = vmatpush.bf16.msra.mxu1 %v2143_v4  ;;  %v2641_v4 = vld [vmem:[#allocation10 + $0x4c] sm:$0xf] }
  0x61   :  { %907 = vmatpush.bf16.msra.mxu2 %v2147_v5  ;;  %v2100_v5 = vld [vmem:[#allocation10 + $0x58] sm:$0xf0] }
  0x62   :  { %920 = vmatpush.bf16.msra.mxu3 %v2151_v11  ;;  %v2103_v6 = vor.u32 %v2641_v4, %v2100_v5  ;;  %v2638_v11 = vld [vmem:[#allocation10 + $0x2c] sm:$0xf0] }
  0x66   :  { %614 = vmatmul.bf16.vlgmr.msrb.gmra.mxu0 %v2956_v8  ;;  %921 = vmatpush.bf16.msra.mxu3 %v2135_v32  ;;  %v2637_v32 = vld [vmem:[#allocation10 + $0x2c] sm:$0xf] }
  0x67   :  { %627 = vmatmul.bf16.vlgmr.msrb.gmra.mxu1 %v2956_v8 }
  0x68   :  { %640 = vmatmul.bf16.vlgmr.msrb.gmra.mxu2 %v2956_v8 }
  0x69   :  { %653 = vmatmul.bf16.vlgmr.msrb.gmra.mxu3 %v2956_v8 }
  0x6a   :  { %922 = vmatpush.bf16.msra.mxu3 %v2119_v55 }
  0x6e   :  { %923 = vmatpush.bf16.msra.mxu3 %v2103_v6 }
  0xb3   :  { %v2998_v9 = vpop.f32.mrf.mxu0 }
  0xb4   :  { %v3000_v10 = vpop.f32.mrf.mxu1 }
  0xbb   :  { %v3004_v13 = vpop.f32.mrf.mxu2  ;;  %v306_v16 = vpop.f32.mrf.mxu0 }
  0xbc   :  { %v3008_v15 = vpop.f32.mrf.mxu3  ;;  %v3011_v17 = vadd.f32 %v306_v16, %v3002_v12  ;;  %v329_v18 = vpop.f32.mrf.mxu1  ;;  %v2122_v16 = vld [vmem:[#allocation10 + $0x80] sm:$0xf]  ;;  %v351_v5 = vadd.f32 %v3004_v13, %v3016_v20 }
  0xbd   :  { %v3014_v19 = vadd.f32 %v329_v18, %v3006_v14  ;;  %v2650_v18 = vld [vmem:[#allocation10 + $0x8c] sm:$0xf0] }
  0xbe   :  { %v2123_v23 = vor.u32 %v2650_v18, %v2122_v16  ;;  %v2636_v16 = vld [vmem:[#allocation10 + $0x24] sm:$0xf] }
  0xc0   :  { %882 = vmatpush.bf16.msra.mxu0 %v2123_v23  ;;  %v2076_v23 = vld [vmem:[#allocation10 + $0x30] sm:$0xf0] }
  0xc1   :  { %v2079_v30 = vor.u32 %v2636_v16, %v2076_v23 }
  0xc3   :  { %v352_v22 = vpop.f32.mrf.mxu2  ;;  %v309_v28 = vpop.f32.mrf.mxu0 }
  0xc4   :  { %v3021_v26 = vadd.f32 %v352_v22, %v3016_v20  ;;  %v375_v27 = vpop.f32.mrf.mxu3  ;;  %v3027_v34 = vadd.f32 %v309_v28, %v3002_v12  ;;  %v332_v35 = vpop.f32.mrf.mxu1  ;;  %v2648_v22 = vld [vmem:[#allocation10 + $0x84] sm:$0xf]  ;;  %883 = vmatpush.bf16.msra.mxu0 %v2107_v43 }
  0xc5   :  { %v3024_v33 = vadd.f32 %v375_v27, %v3018_v21  ;;  %v3030_v40 = vadd.f32 %v332_v35, %v3006_v14  ;;  %v2651_v27 = vld [vmem:[#allocation10 + $0x94] sm:$0xf0]  ;;  %v2127_v28 = vor.u32 %v2648_v22, %v2124_v24  ;;  %v2075_v22 = vor.u32 %v2638_v11, %v2074_v7  ;;  %v2082_v24 = vld [vmem:[#allocation10 + $0x28] sm:$0xf]  ;;  %v2632_v43 = vld [vmem:[#allocation10 + $0x4] sm:$0xf] }
  0xc6   :  { %v2131_v29 = vor.u32 %v2651_v27, %v2130_v25  ;;  %v2639_v25 = vld [vmem:[#allocation10 + $0x34] sm:$0xf0] }
  0xc7   :  { %895 = vmatpush.bf16.msra.mxu1 %v2127_v28  ;;  %v2083_v31 = vor.u32 %v2639_v25, %v2082_v24 }
  0xc8   :  { %908 = vmatpush.bf16.msra.mxu2 %v2131_v29 }
  0xcb   :  { %v355_v54 = vpop.f32.mrf.mxu2  ;;  %v311_v60 = vpop.f32.mrf.mxu0  ;;  %896 = vmatpush.bf16.msra.mxu1 %v2111_v50  ;;  %v2633_v50 = vld [vmem:[#allocation10 + $0xc] sm:$0xf] }
  0xcc   :  { %v3033_v58 = vadd.f32 %v355_v54, %v3016_v20  ;;  %v378_v59 = vpop.f32.mrf.mxu3  ;;  %v3039_v2 = vadd.f32 %v311_v60, %v3002_v12  ;;  %v334_v3 = vpop.f32.mrf.mxu1  ;;  %909 = vmatpush.bf16.msra.mxu2 %v2115_v51  ;;  %v2091_v60 = vor.u32 %v2642_v57, %v2090_v56  ;;  %v2063_v51 = vor.u32 %v2632_v43, %v2060_v44  ;;  %v2694_v43 = vld [vmem:[#allocation10 + $0xec] sm:$0xf0]  ;;  %v2692_v44 = vld [vmem:[#allocation10 + $0xe4] sm:$0xf] }
  0xcd   :  { %v3036_v1 = vadd.f32 %v378_v59, %v3018_v21  ;;  %v3042_v8 = vadd.f32 %v334_v3, %v3006_v14  ;;  %v2640_v59 = vld [vmem:[#allocation10 + $0x44] sm:$0xf]  ;;  %v2099_v3 = vor.u32 %v2643_v63, %v2098_v62  ;;  %v2071_v55 = vor.u32 %v2633_v50, %v2068_v53  ;;  %v2695_v50 = vld [vmem:[#allocation10 + $0xf4] sm:$0xf0]  ;;  %v2693_v53 = vld [vmem:[#allocation10 + $0xec] sm:$0xf] }
  0xce   :  { %v2095_v0 = vor.u32 %v2640_v59, %v2092_v61  ;;  %884 = vmatpush.bf16.msra.mxu0 %v2091_v60  ;;  %v305_v56 = vadd.f32 %v2998_v9, %v3002_v12  ;;  %v328_v59 = vadd.f32 %v3000_v10, %v3006_v14  ;;  %v374_v9 = vadd.f32 %v3008_v15, %v3018_v21 }
  0xd0   :  { %897 = vmatpush.bf16.msra.mxu1 %v2095_v0  ;;  %910 = vmatpush.bf16.msra.mxu2 %v2099_v3 }
  0xd2   :  { %885 = vmatpush.bf16.msra.mxu0 %v2075_v22 }
  0xd3   :  { %v357_v35 = vpop.f32.mrf.mxu2  ;;  %v314_v42 = vpop.f32.mrf.mxu0 }
  0xd4   :  { %v3045_v39 = vadd.f32 %v357_v35, %v3016_v20  ;;  %v380_v41 = vpop.f32.mrf.mxu3  ;;  %v3051_v48 = vadd.f32 %v314_v42, %v3002_v12  ;;  %v337_v49 = vpop.f32.mrf.mxu1  ;;  %v2084_v35 = vld [vmem:[#allocation10 + $0x38] sm:$0xf0]  ;;  %v2634_v42 = vld [vmem:[#allocation10 + $0xc] sm:$0xf0]  ;;  %898 = vmatpush.bf16.msra.mxu1 %v2079_v30  ;;  %911 = vmatpush.bf16.msra.mxu2 %v2083_v31 }
  0xd5   :  { %v3048_v47 = vadd.f32 %v380_v41, %v3018_v21  ;;  %v3054_v54 = vadd.f32 %v337_v49, %v3006_v14  ;;  %v2087_v41 = vor.u32 %v2637_v32, %v2084_v35  ;;  %v2059_v45 = vor.u32 %v2634_v42, %v2058_v36  ;;  %v2635_v49 = vld [vmem:[#allocation10 + $0x14] sm:$0xf0]  ;;  %v2298_v42 = vld [vmem:[#allocation10 + $0xe0] sm:$0xf] }
  0xd6   :  { %v2067_v52 = vor.u32 %v2635_v49, %v2066_v46  ;;  %v2300_v46 = vld [vmem:[#allocation10 + $0xf0] sm:$0xf0]  ;;  %v2306_v49 = vld [vmem:[#allocation10 + $0xe8] sm:$0xf] }
  0xd7   :  { %924 = vmatpush.bf16.msra.mxu3 %v2087_v41  ;;  %886 = vmatpush.bf16.msra.mxu0 %v2059_v45  ;;  %v2299_v45 = vor.u32 %v2694_v43, %v2298_v42  ;;  %v2234_v43 = vld [vmem:[#allocation10 + $0x60] sm:$0xf] }
  0xd8   :  { %899 = vmatpush.bf16.msra.mxu1 %v2063_v51  ;;  %912 = vmatpush.bf16.msra.mxu2 %v2067_v52  ;;  %v2303_v51 = vor.u32 %v2692_v44, %v2300_v46  ;;  %v2307_v52 = vor.u32 %v2695_v50, %v2306_v49  ;;  %v2678_v44 = vld [vmem:[#allocation10 + $0x6c] sm:$0xf0]  ;;  %v2236_v49 = vld [vmem:[#allocation10 + $0x70] sm:$0xf0]  ;;  %v2242_v50 = vld [vmem:[#allocation10 + $0x68] sm:$0xf] }
  0xd9   :  { %v2235_v46 = vor.u32 %v2678_v44, %v2234_v43 }
  0xdb   :  { %v360_v18 = vpop.f32.mrf.mxu2  ;;  %v316_v29 = vpop.f32.mrf.mxu0  ;;  %925 = vmatpush.bf16.msra.mxu3 %v2071_v55  ;;  %v2308_v55 = vld [vmem:[#allocation10 + $0xf8] sm:$0xf0]  ;;  %1153 = vmatpush.bf16.msrb.mxu0 %v2299_v45  ;;  %v2676_v45 = vld [vmem:[#allocation10 + $0x64] sm:$0xf] }
  0xdc   :  { %v3057_v27 = vadd.f32 %v360_v18, %v3016_v20  ;;  %v383_v28 = vpop.f32.mrf.mxu3  ;;  %v339_v38 = vpop.f32.mrf.mxu1  ;;  %1166 = vmatpush.bf16.msrb.mxu1 %v2303_v51  ;;  %1179 = vmatpush.bf16.msrb.mxu2 %v2307_v52  ;;  %v2679_v51 = vld [vmem:[#allocation10 + $0x74] sm:$0xf0]  ;;  %v2239_v52 = vor.u32 %v2676_v45, %v2236_v49 }
  0xdd   :  { %v3060_v37 = vadd.f32 %v383_v28, %v3018_v21 }
  0xe3   :  { %v362_v57 = vpop.f32.mrf.mxu2  ;;  %v615_v61 = vpop.f32.mrf.mxu0 }
  0xe4   :  { %v385_v60 = vpop.f32.mrf.mxu3  ;;  %v658_v62 = vadd.f32 %v615_v61, %v305_v56  ;;  %v628_v63 = vpop.f32.mrf.mxu1  ;;  %v2311_v56 = vor.u32 %v2693_v53, %v2308_v55  ;;  %v2282_v57 = vld [vmem:[#allocation10 + $0xc0] sm:$0xf]  ;;  %v2243_v53 = vor.u32 %v2679_v51, %v2242_v50  ;;  %v2677_v55 = vld [vmem:[#allocation10 + $0x6c] sm:$0xf] }
  0xe5   :  { %v659_v0 = vadd.f32 %v628_v63, %v328_v59  ;;  %v2690_v59 = vld [vmem:[#allocation10 + $0xcc] sm:$0xf0]  ;;  %v2688_v60 = vld [vmem:[#allocation10 + $0xc4] sm:$0xf]  ;;  %v2290_v63 = vld [vmem:[#allocation10 + $0xc8] sm:$0xf] }
  0xe6   :  { %v662_v3 = vmul.f32 0.5, %v658_v62  ;;  %1192 = vmatpush.bf16.msrb.mxu3 %v2311_v56  ;;  %v2283_v61 = vor.u32 %v2690_v59, %v2282_v57  ;;  %v2284_v62 = vld [vmem:[#allocation10 + $0xd0] sm:$0xf0]  ;;  %v2244_v56 = vld [vmem:[#allocation10 + $0x78] sm:$0xf0] }
  0xe7   :  { %v663_v4 = vmul.f32 0.5, %v659_v0  ;;  %v2691_v0 = vld [vmem:[#allocation10 + $0xd4] sm:$0xf0]  ;;  %v2247_v57 = vor.u32 %v2677_v55, %v2244_v56  ;;  %v2218_v59 = vld [vmem:[#allocation10 + $0x40] sm:$0xf] }
  0xe8   :  { %2770 = vtanh.f32 %v662_v3  ;;  %v2287_v3 = vor.u32 %v2688_v60, %v2284_v62  ;;  %1154 = vmatpush.bf16.msrb.mxu0 %v2283_v61  ;;  %v2674_v60 = vld [vmem:[#allocation10 + $0x4c] sm:$0xf0]  ;;  %v2672_v61 = vld [vmem:[#allocation10 + $0x44] sm:$0xf] }
  0xe9   :  { %2772 = vtanh.f32 %v663_v4  ;;  %v2291_v4 = vor.u32 %v2691_v0, %v2290_v63  ;;  %v2219_v62 = vor.u32 %v2674_v60, %v2218_v59  ;;  %v2220_v63 = vld [vmem:[#allocation10 + $0x50] sm:$0xf0]  ;;  %v2226_v0 = vld [vmem:[#allocation10 + $0x48] sm:$0xf] }
  0xea   :  { %1167 = vmatpush.bf16.msrb.mxu1 %v2287_v3  ;;  %v2675_v3 = vld [vmem:[#allocation10 + $0x54] sm:$0xf0] }
  0xeb   :  { %v641_v12 = vpop.f32.mrf.mxu2  ;;  %v617_v10 = vpop.f32.mrf.mxu0  ;;  %1180 = vmatpush.bf16.msrb.mxu2 %v2291_v4  ;;  %v2223_v4 = vor.u32 %v2672_v61, %v2220_v63 }
  0xec   :  { %v660_v6 = vadd.f32 %v641_v12, %v351_v5  ;;  %v654_v7 = vpop.f32.mrf.mxu3  ;;  %v630_v11 = vpop.f32.mrf.mxu1  ;;  %v2689_v5 = vld [vmem:[#allocation10 + $0xcc] sm:$0xf]  ;;  %v2684_v10 = vld [vmem:[#allocation10 + $0xa4] sm:$0xf] }
  0xed   :  { %v661_v14 = vadd.f32 %v654_v7, %v374_v9  ;;  %v2292_v9 = vld [vmem:[#allocation10 + $0xd8] sm:$0xf0]  ;;  %v2686_v7 = vld [vmem:[#allocation10 + $0xac] sm:$0xf0]  ;;  %v2268_v11 = vld [vmem:[#allocation10 + $0xb0] sm:$0xf0] }
  0xee   :  { %v664_v16 = vmul.f32 0.5, %v660_v6  ;;  %v2771_v18 = vpop.eup %2770  ;;  %v2295_v12 = vor.u32 %v2689_v5, %v2292_v9  ;;  %v2266_v6 = vld [vmem:[#allocation10 + $0xa0] sm:$0xf]  ;;  %v2227_v5 = vor.u32 %v2675_v3, %v2226_v0  ;;  %v2673_v9 = vld [vmem:[#allocation10 + $0x4c] sm:$0xf] }
  0xef   :  { %2774 = vtanh.f32 %v661_v14  ;;  %v2773_v22 = vpop.eup %2772  ;;  %v668_v23 = vmul.f32 0.5, %v2771_v18  ;;  %v2267_v14 = vor.u32 %v2686_v7, %v2266_v6  ;;  %v2687_v18 = vld [vmem:[#allocation10 + $0xb4] sm:$0xf0]  ;;  %v2202_v7 = vld [vmem:[#allocation10 + $0x20] sm:$0xf] }
  0xf0   :  { %v669_v24 = vmul.f32 0.5, %v2773_v22  ;;  %2776 = vtanh.f32 %v664_v16  ;;  %1193 = vmatpush.bf16.msrb.mxu3 %v2295_v12  ;;  %v2274_v16 = vld [vmem:[#allocation10 + $0xa8] sm:$0xf]  ;;  %v2271_v22 = vor.u32 %v2684_v10, %v2268_v11  ;;  %v2228_v12 = vld [vmem:[#allocation10 + $0x58] sm:$0xf0] }
  0xf1   :  { %v671_v25 = vadd.f32 0.5, %v668_v23  ;;  %v2275_v23 = vor.u32 %v2687_v18, %v2274_v16  ;;  %1155 = vmatpush.bf16.msrb.mxu0 %v2267_v14  ;;  %v2231_v6 = vor.u32 %v2673_v9, %v2228_v12  ;;  %v2670_v10 = vld [vmem:[#allocation10 + $0x2c] sm:$0xf0]  ;;  %v2668_v14 = vld [vmem:[#allocation10 + $0x24] sm:$0xf] }
  0xf2   :  { %v672_v28 = vadd.f32 0.5, %v669_v24  ;;  %v2685_v24 = vld [vmem:[#allocation10 + $0xac] sm:$0xf]  ;;  %1168 = vmatpush.bf16.msrb.mxu1 %v2271_v22  ;;  %v2203_v11 = vor.u32 %v2670_v10, %v2202_v7  ;;  %v2204_v16 = vld [vmem:[#allocation10 + $0x30] sm:$0xf0] }
  0xf3   :  { %v643_v13 = vpop.f32.mrf.mxu2  ;;  %1181 = vmatpush.bf16.msrb.mxu2 %v2275_v23  ;;  %v2210_v18 = vld [vmem:[#allocation10 + $0x28] sm:$0xf]  ;;  %v2671_v22 = vld [vmem:[#allocation10 + $0x34] sm:$0xf0]  ;;  %v2207_v23 = vor.u32 %v2668_v14, %v2204_v16  ;;  %v2426_v16 = vld [vmem:[#allocation10 + $0xe0] sm:$0xf] }
  0xf4   :  { %v656_v20 = vpop.f32.mrf.mxu3  ;;  %v675_v30 = vmul.f32 0.0, %v672_v28  ;;  %v2250_v13 = vld [vmem:[#allocation10 + $0x80] sm:$0xf] }
  0xf5   :  { %v2775_v29 = vpop.eup %2774  ;;  %v2682_v20 = vld [vmem:[#allocation10 + $0x8c] sm:$0xf0] }
  0xf6   :  { %v676_v15 = vmul.f32 %v2775_v29, %v671_v25  ;;  %v2777_v21 = vpop.eup %2776  ;;  %v2276_v25 = vld [vmem:[#allocation10 + $0xb8] sm:$0xf0]  ;;  %v2680_v29 = vld [vmem:[#allocation10 + $0x84] sm:$0xf] }
  0xf7   :  { %v670_v32 = vmul.f32 0.5, %v2777_v21  ;;  %v2279_v28 = vor.u32 %v2685_v24, %v2276_v25  ;;  %v2258_v21 = vld [vmem:[#allocation10 + $0x88] sm:$0xf]  ;;  %v2211_v24 = vor.u32 %v2671_v22, %v2210_v18  ;;  %v2669_v25 = vld [vmem:[#allocation10 + $0x2c] sm:$0xf] }
  0xf8   :  { %v3070_v31 = vadd.f32 %v676_v15, %v675_v30  ;;  %v2251_v30 = vor.u32 %v2682_v20, %v2250_v13  ;;  %v2252_v15 = vld [vmem:[#allocation10 + $0x90] sm:$0xf0]  ;;  %v2186_v13 = vld [vmem:[#allocation10] sm:$0xf]  ;;  %v2726_v18 = vld [vmem:[#allocation10 + $0xec] sm:$0xf0] }
  0xf9   :  { %v673_v35 = vadd.f32 0.5, %v670_v32  ;;  %1194 = vmatpush.bf16.msrb.mxu3 %v2279_v28  ;;  %v2683_v32 = vld [vmem:[#allocation10 + $0x94] sm:$0xf0]  ;;  %v2212_v28 = vld [vmem:[#allocation10 + $0x38] sm:$0xf0] }
  0xfa   :  { %2778 = vtanh.f32 %v3070_v31  ;;  %1156 = vmatpush.bf16.msrb.mxu0 %v2251_v30  ;;  %v2215_v20 = vor.u32 %v2669_v25, %v2212_v28  ;;  %v2664_v30 = vld [vmem:[#allocation10 + $0x4] sm:$0xf]  ;;  %v2727_v25 = vld [vmem:[#allocation10 + $0xf4] sm:$0xf0] }
  0xfb   :  { %v2724_v22 = vld [vmem:[#allocation10 + $0xe4] sm:$0xf] }
  0xfe   :  { %1157 = vmatpush.bf16.msrb.mxu0 %v2235_v46 }
 0x100   :  { %v2779_v36 = vpop.eup %2778 }
 0x101   :  { %v679_v38 = vmul.f32 %v2779_v36, %v673_v35  ;;  %v2255_v35 = vor.u32 %v2680_v29, %v2252_v15  ;;  %v2259_v36 = vor.u32 %v2683_v32, %v2258_v21  ;;  %v2666_v29 = vld [vmem:[#allocation10 + $0xc] sm:$0xf0]  ;;  %v2188_v15 = vld [vmem:[#allocation10 + $0x10] sm:$0xf0]  ;;  %v2194_v32 = vld [vmem:[#allocation10 + $0x8] sm:$0xf] }
 0x102   :  { %1158 = vmatpush.bf16.msrb.mxu0 %v2219_v62  ;;  %v2187_v21 = vor.u32 %v2666_v29, %v2186_v13  ;;  %v2436_v29 = vld [vmem:[#allocation10 + $0xf8] sm:$0xf0] }
 0x103   :  { %680 = vst [vmem:[#allocation13] sm:$0xff] %v679_v38  ;;  %v686_v41 = vpack.c.bf16 %v679_v38, %v679_v38  ;;  %v2681_v38 = vld [vmem:[#allocation10 + $0x8c] sm:$0xf]  ;;  %1169 = vmatpush.bf16.msrb.mxu1 %v2255_v35  ;;  %1182 = vmatpush.bf16.msrb.mxu2 %v2259_v36  ;;  %v2667_v35 = vld [vmem:[#allocation10 + $0x14] sm:$0xf0] }
 0x104   :  { %v2665_v36 = vld [vmem:[#allocation10 + $0xc] sm:$0xf] }
 0x105   :  { %887 = vmatmul.bf16.vlgmr.msra.gmra.mxu0 %v686_v41  ;;  %900 = vmatmul.bf16.vlgmr.msra.gmra.mxu1 %v686_v41 }
 0x106   :  { %913 = vmatmul.bf16.vlgmr.msra.gmra.mxu2 %v686_v41  ;;  %926 = vmatmul.bf16.vlgmr.msra.gmra.mxu3 %v686_v41  ;;  %v2260_v41 = vld [vmem:[#allocation10 + $0x98] sm:$0xf0] }
 0x107   :  { %v2263_v42 = vor.u32 %v2681_v38, %v2260_v41  ;;  %1170 = vmatpush.bf16.msrb.mxu1 %v2239_v52  ;;  %1183 = vmatpush.bf16.msrb.mxu2 %v2243_v53  ;;  %v2191_v38 = vor.u32 %v2664_v30, %v2188_v15  ;;  %v2195_v41 = vor.u32 %v2667_v35, %v2194_v32  ;;  %v2410_v15 = vld [vmem:[#allocation10 + $0xc0] sm:$0xf]  ;;  %v2720_v32 = vld [vmem:[#allocation10 + $0xc4] sm:$0xf] }
 0x108   :  { %1159 = vmatpush.bf16.msrb.mxu0 %v2203_v11 }
 0x109   :  { %1195 = vmatpush.bf16.msrb.mxu3 %v2263_v42  ;;  %v2196_v42 = vld [vmem:[#allocation10 + $0x18] sm:$0xf0] }
 0x10a   :  { %v2199_v43 = vor.u32 %v2665_v36, %v2196_v42  ;;  %v2412_v36 = vld [vmem:[#allocation10 + $0xd0] sm:$0xf0] }
 0x10b   :  { %1171 = vmatpush.bf16.msrb.mxu1 %v2223_v4  ;;  %1184 = vmatpush.bf16.msrb.mxu2 %v2227_v5  ;;  %v2415_v42 = vor.u32 %v2720_v32, %v2412_v36  ;;  %v2354_v32 = vld [vmem:[#allocation10 + $0x48] sm:$0xf] }
 0x10c   :  { %1160 = vmatpush.bf16.msrb.mxu0 %v2187_v21  ;;  %v2722_v21 = vld [vmem:[#allocation10 + $0xcc] sm:$0xf0] }
 0x10d   :  { %1196 = vmatpush.bf16.msrb.mxu3 %v2247_v57  ;;  %v2411_v35 = vor.u32 %v2722_v21, %v2410_v15  ;;  %v2348_v21 = vld [vmem:[#allocation10 + $0x50] sm:$0xf0] }
 0x10f   :  { %1172 = vmatpush.bf16.msrb.mxu1 %v2207_v23  ;;  %1185 = vmatpush.bf16.msrb.mxu2 %v2211_v24  ;;  %v2428_v23 = vld [vmem:[#allocation10 + $0xf0] sm:$0xf0]  ;;  %v2434_v24 = vld [vmem:[#allocation10 + $0xe8] sm:$0xf] }
 0x110   :  { %v2431_v28 = vor.u32 %v2724_v22, %v2428_v23  ;;  %v2435_v13 = vor.u32 %v2727_v25, %v2434_v24  ;;  %v2370_v22 = vld [vmem:[#allocation10 + $0x68] sm:$0xf]  ;;  %v2709_v25 = vld [vmem:[#allocation10 + $0x6c] sm:$0xf] }
 0x111   :  { %1197 = vmatpush.bf16.msrb.mxu3 %v2231_v6 }
 0x113   :  { %1173 = vmatpush.bf16.msrb.mxu1 %v2191_v38  ;;  %1186 = vmatpush.bf16.msrb.mxu2 %v2195_v41  ;;  %v2418_v38 = vld [vmem:[#allocation10 + $0xc8] sm:$0xf]  ;;  %v2723_v41 = vld [vmem:[#allocation10 + $0xd4] sm:$0xf0] }
 0x115   :  { %1198 = vmatpush.bf16.msrb.mxu3 %v2215_v20  ;;  %v2725_v20 = vld [vmem:[#allocation10 + $0xec] sm:$0xf] }
 0x116   :  { %v2439_v30 = vor.u32 %v2725_v20, %v2436_v29  ;;  %v2346_v20 = vld [vmem:[#allocation10 + $0x40] sm:$0xf]  ;;  %v2706_v29 = vld [vmem:[#allocation10 + $0x4c] sm:$0xf0] }
 0x117   :  { %1440 = vmatpush.bf16.msra.mxu1 %v2431_v28  ;;  %1453 = vmatpush.bf16.msra.mxu2 %v2435_v13  ;;  %v2372_v28 = vld [vmem:[#allocation10 + $0x78] sm:$0xf0]  ;;  %v2347_v15 = vor.u32 %v2706_v29, %v2346_v20 }
 0x118   :  { %v2375_v13 = vor.u32 %v2709_v25, %v2372_v28 }
 0x119   :  { %1199 = vmatpush.bf16.msrb.mxu3 %v2199_v43  ;;  %v2419_v43 = vor.u32 %v2723_v41, %v2418_v38  ;;  %v2705_v41 = vld [vmem:[#allocation10 + $0x4c] sm:$0xf] }
 0x11b   :  { %1441 = vmatpush.bf16.msra.mxu1 %v2415_v42  ;;  %1454 = vmatpush.bf16.msra.mxu2 %v2419_v43  ;;  %v2356_v42 = vld [vmem:[#allocation10 + $0x58] sm:$0xf0] }
 0x11c   :  { %v2359_v43 = vor.u32 %v2705_v41, %v2356_v42 }
 0x11d   :  { %1466 = vmatpush.bf16.msra.mxu3 %v2439_v30  ;;  %v2704_v30 = vld [vmem:[#allocation10 + $0x44] sm:$0xf] }
 0x11e   :  { %v2351_v36 = vor.u32 %v2704_v30, %v2348_v21 }
 0x182   :  { %v888_v44 = vpop.f32.mrf.mxu0  ;;  %v901_v45 = vpop.f32.mrf.mxu1 }
 0x183   :  { %v931_v46 = vadd.f32 %v888_v44, %v3011_v17  ;;  %v932_v49 = vadd.f32 %v901_v45, %v3014_v19  ;;  %v2721_v44 = vld [vmem:[#allocation10 + $0xcc] sm:$0xf]  ;;  %v2420_v45 = vld [vmem:[#allocation10 + $0xd8] sm:$0xf0] }
 0x185   :  { %v935_v50 = vmul.f32 0.5, %v931_v46  ;;  %v936_v51 = vmul.f32 0.5, %v932_v49  ;;  %v2423_v46 = vor.u32 %v2721_v44, %v2420_v45  ;;  %v2394_v49 = vld [vmem:[#allocation10 + $0xa0] sm:$0xf]  ;;  %v2702_v45 = vld [vmem:[#allocation10 + $0x2c] sm:$0xf0] }
 0x186   :  { %v2330_v44 = vld [vmem:[#allocation10 + $0x20] sm:$0xf] }
 0x187   :  { %2780 = vtanh.f32 %v935_v50  ;;  %v2718_v50 = vld [vmem:[#allocation10 + $0xac] sm:$0xf0]  ;;  %1467 = vmatpush.bf16.msra.mxu3 %v2423_v46  ;;  %v2700_v46 = vld [vmem:[#allocation10 + $0x24] sm:$0xf] }
 0x188   :  { %2782 = vtanh.f32 %v936_v51  ;;  %v2716_v51 = vld [vmem:[#allocation10 + $0xa4] sm:$0xf] }
 0x189   :  { %v914_v52 = vpop.f32.mrf.mxu2  ;;  %v927_v53 = vpop.f32.mrf.mxu3 }
 0x18a   :  { %v933_v55 = vadd.f32 %v914_v52, %v3021_v26  ;;  %v934_v56 = vadd.f32 %v927_v53, %v3024_v33  ;;  %v890_v57 = vpop.f32.mrf.mxu0  ;;  %v903_v59 = vpop.f32.mrf.mxu1  ;;  %v2395_v52 = vor.u32 %v2718_v50, %v2394_v49  ;;  %v2396_v53 = vld [vmem:[#allocation10 + $0xb0] sm:$0xf0]  ;;  %v2331_v49 = vor.u32 %v2702_v45, %v2330_v44  ;;  %v2554_v44 = vld [vmem:[#allocation10 + $0xe0] sm:$0xf]  ;;  %v2758_v45 = vld [vmem:[#allocation10 + $0xec] sm:$0xf0] }
 0x18b   :  { %v2399_v57 = vor.u32 %v2716_v51, %v2396_v53  ;;  %v2332_v50 = vld [vmem:[#allocation10 + $0x30] sm:$0xf0]  ;;  %v2338_v51 = vld [vmem:[#allocation10 + $0x28] sm:$0xf] }
 0x18c   :  { %v937_v60 = vmul.f32 0.5, %v933_v55  ;;  %2784 = vtanh.f32 %v934_v56  ;;  %v2402_v55 = vld [vmem:[#allocation10 + $0xa8] sm:$0xf]  ;;  %v2719_v56 = vld [vmem:[#allocation10 + $0xb4] sm:$0xf0]  ;;  %v2335_v53 = vor.u32 %v2700_v46, %v2332_v50 }
 0x18d   :  { %v2781_v61 = vpop.eup %2780  ;;  %v2403_v59 = vor.u32 %v2719_v56, %v2402_v55  ;;  %1442 = vmatpush.bf16.msra.mxu1 %v2399_v57  ;;  %v2701_v56 = vld [vmem:[#allocation10 + $0x2c] sm:$0xf]  ;;  %v2340_v57 = vld [vmem:[#allocation10 + $0x38] sm:$0xf0]  ;;  %v2756_v46 = vld [vmem:[#allocation10 + $0xe4] sm:$0xf] }
 0x18e   :  { %v2783_v62 = vpop.eup %2782  ;;  %v941_v63 = vmul.f32 0.5, %v2781_v61  ;;  %2786 = vtanh.f32 %v937_v60  ;;  %v2717_v60 = vld [vmem:[#allocation10 + $0xac] sm:$0xf]  ;;  %v2404_v61 = vld [vmem:[#allocation10 + $0xb8] sm:$0xf0] }
 0x18f   :  { %v942_v17 = vmul.f32 0.5, %v2783_v62  ;;  %v2407_v62 = vor.u32 %v2717_v60, %v2404_v61  ;;  %1455 = vmatpush.bf16.msra.mxu2 %v2403_v59  ;;  %v2314_v59 = vld [vmem:[#allocation10] sm:$0xf]  ;;  %v2343_v60 = vor.u32 %v2701_v56, %v2340_v57  ;;  %v2698_v61 = vld [vmem:[#allocation10 + $0xc] sm:$0xf0] }
 0x190   :  { %v944_v19 = vadd.f32 0.5, %v941_v63  ;;  %v2378_v63 = vld [vmem:[#allocation10 + $0x80] sm:$0xf]  ;;  %v2562_v50 = vld [vmem:[#allocation10 + $0xe8] sm:$0xf] }
 0x191   :  { %v945_v0 = vadd.f32 0.5, %v942_v17  ;;  %v916_v3 = vpop.f32.mrf.mxu2  ;;  %v929_v4 = vpop.f32.mrf.mxu3  ;;  %v2714_v17 = vld [vmem:[#allocation10 + $0x8c] sm:$0xf0]  ;;  %1468 = vmatpush.bf16.msra.mxu3 %v2407_v62  ;;  %v2696_v62 = vld [vmem:[#allocation10 + $0x4] sm:$0xf] }
 0x192   :  { %v2785_v5 = vpop.eup %2784  ;;  %v2380_v3 = vld [vmem:[#allocation10 + $0x90] sm:$0xf0]  ;;  %v2386_v4 = vld [vmem:[#allocation10 + $0x88] sm:$0xf]  ;;  %v2564_v56 = vld [vmem:[#allocation10 + $0xf8] sm:$0xf0] }
 0x193   :  { %v948_v9 = vmul.f32 %v945_v0, %v3070_v31  ;;  %v949_v12 = vmul.f32 %v2785_v5, %v944_v19  ;;  %v2427_v31 = vor.u32 %v2726_v18, %v2426_v16  ;;  %v2712_v19 = vld [vmem:[#allocation10 + $0x84] sm:$0xf]  ;;  %v2379_v0 = vor.u32 %v2714_v17, %v2378_v63  ;;  %v2715_v5 = vld [vmem:[#allocation10 + $0x94] sm:$0xf0]  ;;  %v2364_v18 = vld [vmem:[#allocation10 + $0x70] sm:$0xf0] }
 0x194   :  { %v2787_v26 = vpop.eup %2786  ;;  %v2316_v63 = vld [vmem:[#allocation10 + $0x10] sm:$0xf0]  ;;  %v2315_v17 = vor.u32 %v2698_v61, %v2314_v59  ;;  %v2538_v59 = vld [vmem:[#allocation10 + $0xc0] sm:$0xf]  ;;  %v2752_v61 = vld [vmem:[#allocation10 + $0xc4] sm:$0xf] }
 0x195   :  { %v3078_v6 = vadd.f32 %v949_v12, %v948_v9  ;;  %v943_v33 = vmul.f32 0.5, %v2787_v26  ;;  %1427 = vmatpush.bf16.msra.mxu0 %v2427_v31  ;;  %v2383_v9 = vor.u32 %v2712_v19, %v2380_v3  ;;  %v2387_v12 = vor.u32 %v2715_v5, %v2386_v4  ;;  %v2713_v26 = vld [vmem:[#allocation10 + $0x8c] sm:$0xf]  ;;  %v2711_v31 = vld [vmem:[#allocation10 + $0x74] sm:$0xf0] }
 0x196   :  { %v2371_v24 = vor.u32 %v2711_v31, %v2370_v22  ;;  %v2322_v19 = vld [vmem:[#allocation10 + $0x8] sm:$0xf]  ;;  %v2697_v3 = vld [vmem:[#allocation10 + $0xc] sm:$0xf]  ;;  %v2319_v4 = vor.u32 %v2696_v62, %v2316_v63  ;;  %v2540_v63 = vld [vmem:[#allocation10 + $0xd0] sm:$0xf0] }
 0x197   :  { %2788 = vtanh.f32 %v3078_v6  ;;  %v946_v7 = vadd.f32 0.5, %v943_v33  ;;  %v2388_v33 = vld [vmem:[#allocation10 + $0x98] sm:$0xf0]  ;;  %1443 = vmatpush.bf16.msra.mxu1 %v2383_v9  ;;  %1456 = vmatpush.bf16.msra.mxu2 %v2387_v12 }
 0x198   :  { %v2324_v9 = vld [vmem:[#allocation10 + $0x18] sm:$0xf0] }
 0x199   :  { %1428 = vmatpush.bf16.msra.mxu0 %v2411_v35  ;;  %v2707_v35 = vld [vmem:[#allocation10 + $0x54] sm:$0xf0]  ;;  %v2327_v12 = vor.u32 %v2697_v3, %v2324_v9 }
 0x19a   :  { %v2355_v38 = vor.u32 %v2707_v35, %v2354_v32 }
 0x19b   :  { %1457 = vmatpush.bf16.msra.mxu2 %v2371_v24 }
 0x19d   :  { %v2789_v10 = vpop.eup %2788  ;;  %1429 = vmatpush.bf16.msra.mxu0 %v2395_v52  ;;  %v2703_v52 = vld [vmem:[#allocation10 + $0x34] sm:$0xf0] }
 0x19e   :  { %v952_v14 = vmul.f32 %v2789_v10, %v946_v7  ;;  %v2391_v7 = vor.u32 %v2713_v26, %v2388_v33  ;;  %v2362_v10 = vld [vmem:[#allocation10 + $0x60] sm:$0xf]  ;;  %v2339_v55 = vor.u32 %v2703_v52, %v2338_v51  ;;  %v2759_v51 = vld [vmem:[#allocation10 + $0xf4] sm:$0xf0] }
 0x19f   :  { %1458 = vmatpush.bf16.msra.mxu2 %v2355_v38 }
 0x1a0   :  { %954 = vst [vmem:[#allocation13 + $0x8] sm:$0xff] %v952_v14  ;;  %v960_v11 = vpack.c.bf16 %v952_v14, %v952_v14  ;;  %v2710_v14 = vld [vmem:[#allocation10 + $0x6c] sm:$0xf0]  ;;  %1469 = vmatpush.bf16.msra.mxu3 %v2391_v7 }
 0x1a1   :  { %1430 = vmatpush.bf16.msra.mxu0 %v2379_v0  ;;  %v2363_v16 = vor.u32 %v2710_v14, %v2362_v10  ;;  %v2699_v0 = vld [vmem:[#allocation10 + $0x14] sm:$0xf0] }
 0x1a2   :  { %1161 = vmatmul.bf16.vlgmr.msrb.gmra.mxu0 %v960_v11  ;;  %1174 = vmatmul.bf16.vlgmr.msrb.gmra.mxu1 %v960_v11  ;;  %v2323_v5 = vor.u32 %v2699_v0, %v2322_v19  ;;  %v2755_v19 = vld [vmem:[#allocation10 + $0xd4] sm:$0xf0]  ;;  %v2543_v0 = vor.u32 %v2752_v61, %v2540_v63  ;;  %v2737_v61 = vld [vmem:[#allocation10 + $0x4c] sm:$0xf] }
 0x1a3   :  { %1187 = vmatmul.bf16.vlgmr.msrb.gmra.mxu2 %v960_v11  ;;  %1200 = vmatmul.bf16.vlgmr.msrb.gmra.mxu3 %v960_v11  ;;  %v2708_v11 = vld [vmem:[#allocation10 + $0x64] sm:$0xf] }
 0x1a4   :  { %v2367_v23 = vor.u32 %v2708_v11, %v2364_v18  ;;  %1470 = vmatpush.bf16.msra.mxu3 %v2375_v13  ;;  %1459 = vmatpush.bf16.msra.mxu2 %v2339_v55  ;;  %v2757_v55 = vld [vmem:[#allocation10 + $0xec] sm:$0xf] }
 0x1a5   :  { %1431 = vmatpush.bf16.msra.mxu0 %v2363_v16  ;;  %v2567_v57 = vor.u32 %v2757_v55, %v2564_v56  ;;  %v2476_v55 = vld [vmem:[#allocation10 + $0x50] sm:$0xf0]  ;;  %v2482_v56 = vld [vmem:[#allocation10 + $0x48] sm:$0xf] }
 0x1a6   :  { %1444 = vmatpush.bf16.msra.mxu1 %v2367_v23 }
 0x1a8   :  { %1471 = vmatpush.bf16.msra.mxu3 %v2359_v43  ;;  %1460 = vmatpush.bf16.msra.mxu2 %v2323_v5  ;;  %v2548_v5 = vld [vmem:[#allocation10 + $0xd8] sm:$0xf0] }
 0x1a9   :  { %1432 = vmatpush.bf16.msra.mxu0 %v2347_v15 }
 0x1aa   :  { %1445 = vmatpush.bf16.msra.mxu1 %v2351_v36 }
 0x1ac   :  { %1472 = vmatpush.bf16.msra.mxu3 %v2343_v60  ;;  %v2754_v60 = vld [vmem:[#allocation10 + $0xcc] sm:$0xf0] }
 0x1ad   :  { %1433 = vmatpush.bf16.msra.mxu0 %v2331_v49  ;;  %v2556_v49 = vld [vmem:[#allocation10 + $0xf0] sm:$0xf0]  ;;  %v2539_v62 = vor.u32 %v2754_v60, %v2538_v59 }
 0x1ae   :  { %1446 = vmatpush.bf16.msra.mxu1 %v2335_v53  ;;  %v2559_v52 = vor.u32 %v2756_v46, %v2556_v49  ;;  %v2563_v53 = vor.u32 %v2759_v51, %v2562_v50  ;;  %v2741_v46 = vld [vmem:[#allocation10 + $0x6c] sm:$0xf]  ;;  %v2474_v50 = vld [vmem:[#allocation10 + $0x40] sm:$0xf]  ;;  %v2738_v51 = vld [vmem:[#allocation10 + $0x4c] sm:$0xf0] }
 0x1b0   :  { %1473 = vmatpush.bf16.msra.mxu3 %v2327_v12  ;;  %1727 = vmatpush.bf16.msrb.mxu2 %v2563_v53  ;;  %v2522_v12 = vld [vmem:[#allocation10 + $0xa0] sm:$0xf]  ;;  %v2475_v53 = vor.u32 %v2738_v51, %v2474_v50 }
 0x1b1   :  { %1434 = vmatpush.bf16.msra.mxu0 %v2315_v17  ;;  %v2546_v17 = vld [vmem:[#allocation10 + $0xc8] sm:$0xf] }
 0x1b2   :  { %1447 = vmatpush.bf16.msra.mxu1 %v2319_v4  ;;  %v2547_v3 = vor.u32 %v2755_v19, %v2546_v17  ;;  %v2753_v4 = vld [vmem:[#allocation10 + $0xcc] sm:$0xf]  ;;  %v2458_v17 = vld [vmem:[#allocation10 + $0x20] sm:$0xf]  ;;  %v2734_v19 = vld [vmem:[#allocation10 + $0x2c] sm:$0xf0] }
 0x1b3   :  { %v2551_v9 = vor.u32 %v2753_v4, %v2548_v5  ;;  %v2460_v4 = vld [vmem:[#allocation10 + $0x30] sm:$0xf0]  ;;  %v2466_v5 = vld [vmem:[#allocation10 + $0x28] sm:$0xf] }
 0x1b4   :  { %1740 = vmatpush.bf16.msrb.mxu3 %v2567_v57  ;;  %1728 = vmatpush.bf16.msrb.mxu2 %v2547_v3  ;;  %v2739_v57 = vld [vmem:[#allocation10 + $0x54] sm:$0xf0]  ;;  %v2459_v3 = vor.u32 %v2734_v19, %v2458_v17 }
 0x1b5   :  { %v2483_v60 = vor.u32 %v2739_v57, %v2482_v56 }
 0x1b6   :  { %1714 = vmatpush.bf16.msrb.mxu1 %v2559_v52  ;;  %v2736_v52 = vld [vmem:[#allocation10 + $0x44] sm:$0xf] }
 0x1b7   :  { %v2479_v59 = vor.u32 %v2736_v52, %v2476_v55 }
 0x1b8   :  { %1741 = vmatpush.bf16.msrb.mxu3 %v2551_v9  ;;  %v2735_v9 = vld [vmem:[#allocation10 + $0x34] sm:$0xf0] }
 0x1ba   :  { %1715 = vmatpush.bf16.msrb.mxu1 %v2543_v0  ;;  %v2732_v0 = vld [vmem:[#allocation10 + $0x24] sm:$0xf] }
 0x21f   :  { %v1162_v26 = vpop.f32.mrf.mxu0  ;;  %v1175_v33 = vpop.f32.mrf.mxu1 }
 0x220   :  { %v1205_v7 = vadd.f32 %v1162_v26, %v3027_v34  ;;  %v1206_v10 = vadd.f32 %v1175_v33, %v3030_v40  ;;  %v2750_v26 = vld [vmem:[#allocation10 + $0xac] sm:$0xf0]  ;;  %v2748_v33 = vld [vmem:[#allocation10 + $0xa4] sm:$0xf] }
 0x222   :  { %v1209_v14 = vmul.f32 0.5, %v1205_v7  ;;  %v1210_v11 = vmul.f32 0.5, %v1206_v10  ;;  %v2523_v7 = vor.u32 %v2750_v26, %v2522_v12  ;;  %v2524_v10 = vld [vmem:[#allocation10 + $0xb0] sm:$0xf0]  ;;  %v2463_v12 = vor.u32 %v2732_v0, %v2460_v4 }
 0x223   :  { %v2467_v26 = vor.u32 %v2735_v9, %v2466_v5 }
 0x224   :  { %2790 = vtanh.f32 %v1209_v14  ;;  %v2530_v14 = vld [vmem:[#allocation10 + $0xa8] sm:$0xf] }
 0x225   :  { %2792 = vtanh.f32 %v1210_v11  ;;  %v2751_v11 = vld [vmem:[#allocation10 + $0xb4] sm:$0xf0] }
 0x226   :  { %v1188_v16 = vpop.f32.mrf.mxu2  ;;  %v1201_v18 = vpop.f32.mrf.mxu3 }
 0x227   :  { %v1207_v22 = vadd.f32 %v1188_v16, %v3033_v58  ;;  %v1208_v31 = vadd.f32 %v1201_v18, %v3036_v1  ;;  %v1164_v23 = vpop.f32.mrf.mxu0  ;;  %v1177_v24 = vpop.f32.mrf.mxu1  ;;  %v2527_v16 = vor.u32 %v2748_v33, %v2524_v10  ;;  %v2531_v18 = vor.u32 %v2751_v11, %v2530_v14  ;;  %v2733_v33 = vld [vmem:[#allocation10 + $0x2c] sm:$0xf]  ;;  %v2442_v10 = vld [vmem:[#allocation10] sm:$0xf]  ;;  %v2730_v11 = vld [vmem:[#allocation10 + $0xc] sm:$0xf0] }
 0x228   :  { %v2506_v24 = vld [vmem:[#allocation10 + $0x80] sm:$0xf] }
 0x229   :  { %v1211_v25 = vmul.f32 0.5, %v1207_v22  ;;  %2794 = vtanh.f32 %v1208_v31  ;;  %v2749_v22 = vld [vmem:[#allocation10 + $0xac] sm:$0xf]  ;;  %v2532_v31 = vld [vmem:[#allocation10 + $0xb8] sm:$0xf0]  ;;  %1716 = vmatpush.bf16.msrb.mxu1 %v2527_v16  ;;  %1729 = vmatpush.bf16.msrb.mxu2 %v2531_v18 }
 0x22a   :  { %v2791_v28 = vpop.eup %2790  ;;  %v2535_v23 = vor.u32 %v2749_v22, %v2532_v31  ;;  %v2728_v16 = vld [vmem:[#allocation10 + $0x4] sm:$0xf]  ;;  %v2444_v18 = vld [vmem:[#allocation10 + $0x10] sm:$0xf0]  ;;  %v2443_v22 = vor.u32 %v2730_v11, %v2442_v10  ;;  %v2450_v31 = vld [vmem:[#allocation10 + $0x8] sm:$0xf] }
 0x22b   :  { %v2793_v13 = vpop.eup %2792  ;;  %v1215_v20 = vmul.f32 0.5, %v2791_v28  ;;  %2796 = vtanh.f32 %v1211_v25  ;;  %v2746_v25 = vld [vmem:[#allocation10 + $0x8c] sm:$0xf0]  ;;  %v2744_v28 = vld [vmem:[#allocation10 + $0x84] sm:$0xf] }
 0x22c   :  { %v1216_v34 = vmul.f32 0.5, %v2793_v13  ;;  %1742 = vmatpush.bf16.msrb.mxu3 %v2535_v23  ;;  %v2507_v13 = vor.u32 %v2746_v25, %v2506_v24  ;;  %v2731_v23 = vld [vmem:[#allocation10 + $0x14] sm:$0xf0]  ;;  %v2729_v24 = vld [vmem:[#allocation10 + $0xc] sm:$0xf]  ;;  %v2447_v25 = vor.u32 %v2728_v16, %v2444_v18 }
 0x22d   :  { %v1218_v40 = vadd.f32 0.5, %v1215_v20  ;;  %v2508_v20 = vld [vmem:[#allocation10 + $0x90] sm:$0xf0] }
 0x22e   :  { %v1219_v29 = vadd.f32 0.5, %v1216_v34  ;;  %v1190_v30 = vpop.f32.mrf.mxu2  ;;  %v1203_v15 = vpop.f32.mrf.mxu3  ;;  %v2514_v34 = vld [vmem:[#allocation10 + $0x88] sm:$0xf] }
 0x22f   :  { %v2795_v21 = vpop.eup %2794  ;;  %v2745_v15 = vld [vmem:[#allocation10 + $0x8c] sm:$0xf] }
 0x230   :  { %v1222_v32 = vmul.f32 %v1219_v29, %v3078_v6  ;;  %v1223_v35 = vmul.f32 %v2795_v21, %v1218_v40  ;;  %v2555_v6 = vor.u32 %v2758_v45, %v2554_v44  ;;  %v2747_v40 = vld [vmem:[#allocation10 + $0x94] sm:$0xf0]  ;;  %v2511_v29 = vor.u32 %v2744_v28, %v2508_v20  ;;  %v2516_v21 = vld [vmem:[#allocation10 + $0x98] sm:$0xf0] }
 0x231   :  { %v2797_v58 = vpop.eup %2796  ;;  %v2515_v30 = vor.u32 %v2747_v40, %v2514_v34  ;;  %v2451_v28 = vor.u32 %v2731_v23, %v2450_v31 }
 0x232   :  { %v3086_v36 = vadd.f32 %v1223_v35, %v1222_v32  ;;  %v1217_v1 = vmul.f32 0.5, %v2797_v58  ;;  %1701 = vmatpush.bf16.msrb.mxu0 %v2555_v6  ;;  %v2519_v32 = vor.u32 %v2745_v15, %v2516_v21  ;;  %1717 = vmatpush.bf16.msrb.mxu1 %v2511_v29  ;;  %v2490_v35 = vld [vmem:[#allocation10 + $0x60] sm:$0xf]  ;;  %v2742_v58 = vld [vmem:[#allocation10 + $0x6c] sm:$0xf0] }
 0x233   :  { %1730 = vmatpush.bf16.msrb.mxu2 %v2515_v30  ;;  %v2500_v6 = vld [vmem:[#allocation10 + $0x78] sm:$0xf0] }
 0x234   :  { %2798 = vtanh.f32 %v3086_v36  ;;  %v1220_v38 = vadd.f32 0.5, %v1217_v1  ;;  %v2740_v1 = vld [vmem:[#allocation10 + $0x64] sm:$0xf]  ;;  %1743 = vmatpush.bf16.msrb.mxu3 %v2519_v32  ;;  %v2503_v49 = vor.u32 %v2741_v46, %v2500_v6 }
 0x236   :  { %1702 = vmatpush.bf16.msrb.mxu0 %v2539_v62  ;;  %v2484_v62 = vld [vmem:[#allocation10 + $0x58] sm:$0xf0] }
 0x237   :  { %v2487_v63 = vor.u32 %v2737_v61, %v2484_v62 }
 0x238   :  { %1744 = vmatpush.bf16.msrb.mxu3 %v2503_v49 }
 0x23a   :  { %v2799_v41 = vpop.eup %2798  ;;  %1703 = vmatpush.bf16.msrb.mxu0 %v2523_v7  ;;  %v2468_v7 = vld [vmem:[#allocation10 + $0x38] sm:$0xf0] }
 0x23b   :  { %v1226_v42 = vmul.f32 %v2799_v41, %v1220_v38  ;;  %v2491_v38 = vor.u32 %v2742_v58, %v2490_v35  ;;  %v2492_v41 = vld [vmem:[#allocation10 + $0x70] sm:$0xf0]  ;;  %v2471_v14 = vor.u32 %v2733_v33, %v2468_v7 }
 0x23c   :  { %v2495_v44 = vor.u32 %v2740_v1, %v2492_v41  ;;  %1745 = vmatpush.bf16.msrb.mxu3 %v2487_v63 }
 0x23d   :  { %1228 = vst [vmem:[#allocation13 + $0x10] sm:$0xff] %v1226_v42  ;;  %v1234_v43 = vpack.c.bf16 %v1226_v42, %v1226_v42  ;;  %v2498_v42 = vld [vmem:[#allocation10 + $0x68] sm:$0xf] }
 0x23e   :  { %1704 = vmatpush.bf16.msrb.mxu0 %v2507_v13  ;;  %1718 = vmatpush.bf16.msrb.mxu1 %v2495_v44  ;;  %v2452_v13 = vld [vmem:[#allocation10 + $0x18] sm:$0xf0] }
 0x23f   :  { %1435 = vmatmul.bf16.vlgmr.msra.gmra.mxu0 %v1234_v43  ;;  %1448 = vmatmul.bf16.vlgmr.msra.gmra.mxu1 %v1234_v43  ;;  %v2455_v20 = vor.u32 %v2729_v24, %v2452_v13 }
 0x240   :  { %1461 = vmatmul.bf16.vlgmr.msra.gmra.mxu2 %v1234_v43  ;;  %1474 = vmatmul.bf16.vlgmr.msra.gmra.mxu3 %v1234_v43  ;;  %v2743_v43 = vld [vmem:[#allocation10 + $0x74] sm:$0xf0] }
 0x241   :  { %v2499_v45 = vor.u32 %v2743_v43, %v2498_v42  ;;  %1746 = vmatpush.bf16.msrb.mxu3 %v2471_v14 }
 0x242   :  { %1705 = vmatpush.bf16.msrb.mxu0 %v2491_v38  ;;  %1719 = vmatpush.bf16.msrb.mxu1 %v2479_v59 }
 0x243   :  { %1731 = vmatpush.bf16.msrb.mxu2 %v2499_v45 }
 0x245   :  { %1747 = vmatpush.bf16.msrb.mxu3 %v2455_v20 }
 0x246   :  { %1706 = vmatpush.bf16.msrb.mxu0 %v2475_v53  ;;  %1720 = vmatpush.bf16.msrb.mxu1 %v2463_v12 }
 0x247   :  { %1732 = vmatpush.bf16.msrb.mxu2 %v2483_v60 }
 0x24a   :  { %1707 = vmatpush.bf16.msrb.mxu0 %v2459_v3  ;;  %1721 = vmatpush.bf16.msrb.mxu1 %v2447_v25 }
 0x24b   :  { %1733 = vmatpush.bf16.msrb.mxu2 %v2467_v26 }
 0x24e   :  { %1708 = vmatpush.bf16.msrb.mxu0 %v2443_v22 }
 0x24f   :  { %1734 = vmatpush.bf16.msrb.mxu2 %v2451_v28 }
 0x2bc   :  { %v1436_v34 = vpop.f32.mrf.mxu0  ;;  %v1449_v40 = vpop.f32.mrf.mxu1 }
 0x2bd   :  { %v1479_v29 = vadd.f32 %v1436_v34, %v3039_v2  ;;  %v1480_v30 = vadd.f32 %v1449_v40, %v3042_v8 }
 0x2bf   :  { %v1483_v15 = vmul.f32 0.5, %v1479_v29  ;;  %v1484_v21 = vmul.f32 0.5, %v1480_v30 }
 0x2c1   :  { %2800 = vtanh.f32 %v1483_v15 }
 0x2c2   :  { %2802 = vtanh.f32 %v1484_v21 }
 0x2c3   :  { %v1462_v32 = vpop.f32.mrf.mxu2  ;;  %v1475_v35 = vpop.f32.mrf.mxu3 }
 0x2c4   :  { %v1481_v58 = vadd.f32 %v1462_v32, %v3045_v39  ;;  %v1482_v1 = vadd.f32 %v1475_v35, %v3048_v47  ;;  %v1438_v38 = vpop.f32.mrf.mxu0  ;;  %v1451_v41 = vpop.f32.mrf.mxu1 }
 0x2c6   :  { %v1485_v42 = vmul.f32 0.5, %v1481_v58  ;;  %2804 = vtanh.f32 %v1482_v1 }
 0x2c7   :  { %v2801_v43 = vpop.eup %2800 }
 0x2c8   :  { %v2803_v44 = vpop.eup %2802  ;;  %v1489_v45 = vmul.f32 0.5, %v2801_v43  ;;  %2806 = vtanh.f32 %v1485_v42 }
 0x2c9   :  { %v1490_v2 = vmul.f32 0.5, %v2803_v44 }
 0x2ca   :  { %v1492_v8 = vadd.f32 0.5, %v1489_v45 }
 0x2cb   :  { %v1493_v46 = vadd.f32 0.5, %v1490_v2  ;;  %v1464_v6 = vpop.f32.mrf.mxu2  ;;  %v1477_v49 = vpop.f32.mrf.mxu3 }
 0x2cc   :  { %v2805_v50 = vpop.eup %2804 }
 0x2cd   :  { %v1496_v51 = vmul.f32 %v1493_v46, %v3086_v36  ;;  %v1497_v52 = vmul.f32 %v2805_v50, %v1492_v8 }
 0x2ce   :  { %v2807_v39 = vpop.eup %2806 }
 0x2cf   :  { %v1498_v53 = vadd.f32 %v1497_v52, %v1496_v51  ;;  %v1491_v47 = vmul.f32 0.5, %v2807_v39 }
 0x2d1   :  { %2808 = vtanh.f32 %v1498_v53  ;;  %v1494_v55 = vadd.f32 0.5, %v1491_v47 }
 0x2d7   :  { %v2809_v56 = vpop.eup %2808 }
 0x2d8   :  { %v1500_v57 = vmul.f32 %v2809_v56, %v1494_v55 }
 0x2da   :  { %1502 = vst [vmem:[#allocation13 + $0x18] sm:$0xff] %v1500_v57  ;;  %v1508_v59 = vpack.c.bf16 %v1500_v57, %v1500_v57 }
 0x2dc   :  { %1709 = vmatmul.bf16.vlgmr.msrb.gmra.mxu0 %v1508_v59  ;;  %1722 = vmatmul.bf16.vlgmr.msrb.gmra.mxu1 %v1508_v59 }
 0x2dd   :  { %1735 = vmatmul.bf16.vlgmr.msrb.gmra.mxu2 %v1508_v59  ;;  %1748 = vmatmul.bf16.vlgmr.msrb.gmra.mxu3 %v1508_v59 }
 0x359   :  { %v1710_v60 = vpop.f32.mrf.mxu0  ;;  %v1723_v61 = vpop.f32.mrf.mxu1 }
 0x35a   :  { %v1753_v62 = vadd.f32 %v1710_v60, %v3051_v48  ;;  %v1754_v36 = vadd.f32 %v1723_v61, %v3054_v54 }
 0x35c   :  { %v1757_v63 = vmul.f32 0.5, %v1753_v62  ;;  %v1758_v17 = vmul.f32 0.5, %v1754_v36 }
 0x35e   :  { %2810 = vtanh.f32 %v1757_v63 }
 0x35f   :  { %2812 = vtanh.f32 %v1758_v17 }
 0x360   :  { %v1736_v19 = vpop.f32.mrf.mxu2  ;;  %v1749_v0 = vpop.f32.mrf.mxu3 }
 0x361   :  { %v1755_v3 = vadd.f32 %v1736_v19, %v3057_v27  ;;  %v1756_v4 = vadd.f32 %v1749_v0, %v3060_v37  ;;  %v1712_v5 = vpop.f32.mrf.mxu0  ;;  %v1725_v9 = vpop.f32.mrf.mxu1 }
 0x363   :  { %v1759_v12 = vmul.f32 0.5, %v1755_v3  ;;  %2814 = vtanh.f32 %v1756_v4 }
 0x364   :  { %v2811_v26 = vpop.eup %2810 }
 0x365   :  { %v2813_v33 = vpop.eup %2812  ;;  %v1763_v7 = vmul.f32 0.5, %v2811_v26  ;;  %2816 = vtanh.f32 %v1759_v12 }
 0x366   :  { %v1764_v48 = vmul.f32 0.5, %v2813_v33 }
 0x367   :  { %v1766_v54 = vadd.f32 0.5, %v1763_v7 }
 0x368   :  { %v1767_v10 = vadd.f32 0.5, %v1764_v48  ;;  %v1738_v14 = vpop.f32.mrf.mxu2  ;;  %v1751_v11 = vpop.f32.mrf.mxu3 }
 0x369   :  { %v2815_v16 = vpop.eup %2814 }
 0x36a   :  { %v1770_v18 = vmul.f32 %v1767_v10, %v1498_v53  ;;  %v1771_v22 = vmul.f32 %v2815_v16, %v1766_v54 }
 0x36b   :  { %v2817_v31 = vpop.eup %2816 }
 0x36c   :  { %v1772_v27 = vadd.f32 %v1771_v22, %v1770_v18  ;;  %v1765_v37 = vmul.f32 0.5, %v2817_v31 }
 0x36e   :  { %2818 = vtanh.f32 %v1772_v27  ;;  %v1768_v23 = vadd.f32 0.5, %v1765_v37 }
 0x374   :  { %v2819_v24 = vpop.eup %2818 }
 0x375   :  { %v1774_v25 = vmul.f32 %v2819_v24, %v1768_v23 }
 0x377   :  { %1776 = vst [vmem:[#allocation13 + $0x20] sm:$0xff] %v1774_v25 }
 0x378   :  { %1791 = dma.vmem_to_hbm [thread:$0]  %s1784_s3, 640, %s1786_s13, [#allocation7], %s2952_s27, %s2952_s27, %s2953_s28  }
 0x379   :  { %2946 = dma.done.wait [#allocation7], 640  }
 0x37a   :  { %2947 = vsyncadd [#allocation7], 4294966656 }
 0x37b   :  { %1796 = vsyncpa [#allocation6], 1 }
 0x37c   :  { %1797 = vsyncpa [#allocation9], 1 }
 0x37d   :  { %1798 = vsyncpa [#allocation12], 1 }
 0x37e   :  { %1799 = vsyncpa [#allocation7], 1 }

</bundles_post_ra>
